<compile_context>
chip_gen: v7x
topology: tpu7x:2x2x1
jax: 0.10.0
libtpu: 0.0.40
codegen_flags: <defaults>
</compile_context>

<pallas_src>
import math
import functools

import jax
import jax.numpy as jnp
from jax import lax
from jax.experimental import pallas as pl
from jax.experimental.pallas import tpu as pltpu

LAYER_NORM_EPS = 1e-5
NEG_INF = -1e20  # parlai.utils.torch.neginf for float32


def _layer_norm(x, g, b):
    mu = jnp.mean(x, axis=-1, keepdims=True)
    var = jnp.mean((x - mu) ** 2, axis=-1, keepdims=True)
    return (x - mu) * lax.rsqrt(var + LAYER_NORM_EPS) * g + b


def _softmax(x):
    m = jnp.max(x, axis=-1, keepdims=True)
    e = jnp.exp(x - m)
    return e * pl.reciprocal(jnp.sum(e, axis=-1, keepdims=True), approx=True)


def _attend(q_scaled, k_b, v_b, mask_block, wo_ref, bo, n_heads, dh):
    """Multi-head attention core on 2-D tiles.

    q_scaled  : (Tq, D) f32, already divided by sqrt(dh)
    k_b, v_b  : (Tk, D) bf16 values (biases already folded in)
    mask_block: (Tq, Tk) bool, True = blocked
    wo_ref    : (D, D) bf16 VMEM ref (output projection)
    bo        : (1, D) f32

    Per-head scores/PV are statically unrolled; per-head outputs are
    concatenated lane-dense and fed to ONE full-K output projection matmul.
    """
    q_b = q_scaled.astype(jnp.bfloat16)
    heads = []
    for h in range(n_heads):
        lo = h * dh
        s = lax.dot_general(q_b[:, lo:lo + dh], k_b[:, lo:lo + dh],
                            (((1,), (1,)), ((), ())),
                            preferred_element_type=jnp.float32)      # (Tq, Tk)
        s = jnp.where(mask_block, NEG_INF, s)
        p = _softmax(s)                                              # f32
        ah = jnp.dot(p.astype(jnp.bfloat16), v_b[:, lo:lo + dh],
                     preferred_element_type=jnp.float32)             # (Tq, dh)
        heads.append(ah.astype(jnp.bfloat16))
    att = jnp.concatenate(heads, axis=-1)                            # (Tq, D) bf16
    # single K=D output projection (fills the MXU depth), f32 accumulation
    return jnp.dot(att, wo_ref[...], preferred_element_type=jnp.float32) + bo


def decoder_layer_kernel(
    # inputs
    xq_ref, xfull_ref, enc_ref, encmask_ref,
    wq1_ref, wk1_ref, wv1_ref, wo1_ref,
    wq2_ref, wk2_ref, wv2_ref, wo2_ref,
    wf1_ref, wf2_ref, pvec_ref, bf1_ref,
    # outputs
    y_ref, sk_ref, sv_ref, ek_ref, ev_ref,
    # scratch (persists across the query-tile grid axis)
    k1_s, v1_s, k2_s, v2_s,
    *, n_heads, dh, tq,
):
    ti = pl.program_id(1)
    T = xfull_ref.shape[1]
    S = enc_ref.shape[1]
    t0 = pl.multiple_of(ti * tq, tq)
    inv_scale = 1.0 / math.sqrt(dh)

    P = pvec_ref[...]                                 # (15, D) packed f32 params
    bq1, bk1, bv1, bo1, g1, be1 = P[0:1], P[1:2], P[2:3], P[3:4], P[4:5], P[5:6]
    bq2, bk2, bv2, bo2, g2, be2 = P[6:7], P[7:8], P[8:9], P[9:10], P[10:11], P[11:12]
    bf2, g3, be3 = P[12:13], P[13:14], P[14:15]

    # ---- once per batch element: K/V projections for both attentions ----
    @pl.when(ti == 0)
    def _():
        x_b = xfull_ref[0]                            # (T, D) bf16
        k1 = jnp.dot(x_b, wk1_ref[...], preferred_element_type=jnp.float32) + bk1
        v1 = jnp.dot(x_b, wv1_ref[...], preferred_element_type=jnp.float32) + bv1
        k1_s[...] = k1.astype(jnp.bfloat16)
        v1_s[...] = v1.astype(jnp.bfloat16)
        e_b = enc_ref[0]                              # (S, D) bf16
        k2 = jnp.dot(e_b, wk2_ref[...], preferred_element_type=jnp.float32) + bk2
        v2 = jnp.dot(e_b, wv2_ref[...], preferred_element_type=jnp.float32) + bv2
        k2_b = k2.astype(jnp.bfloat16)
        v2_b = v2.astype(jnp.bfloat16)
        k2_s[...] = k2_b
        v2_s[...] = v2_b
        # lane-dense encoder incr-state K/V (same block for every query tile)
        ek_ref[0] = k2_b
        ev_ref[0] = v2_b

    # lane-dense self-attention incr-state K/V rows for this query tile
    sk_ref[0] = k1_s[pl.ds(t0, tq), :]
    sv_ref[0] = v1_s[pl.ds(t0, tq), :]

    xq = xq_ref[0]                                    # (tq, D) f32 query/residual tile

    # ---- self-attention (causal) + residual + norm1 ----
    q1 = (jnp.dot(xq.astype(jnp.bfloat16), wq1_ref[...],
                  preferred_element_type=jnp.float32) + bq1) * inv_scale
    row = lax.broadcasted_iota(jnp.int32, (tq, T), 0) + t0
    col = lax.broadcasted_iota(jnp.int32, (tq, T), 1)
    causal_block = col > row                          # True -> masked out
    sa = _attend(q1, k1_s[...], v1_s[...], causal_block, wo1_ref, bo1,
                 n_heads, dh)
    x1 = _layer_norm(sa + xq, g1, be1)

    # ---- encoder attention + residual + norm2 ----
    q2 = (jnp.dot(x1.astype(jnp.bfloat16), wq2_ref[...],
                  preferred_element_type=jnp.float32) + bq2) * inv_scale
    enc_block = jnp.broadcast_to(encmask_ref[0] == 0.0, (tq, S))
    ea = _attend(q2, k2_s[...], v2_s[...], enc_block, wo2_ref, bo2,
                 n_heads, dh)
    x2 = _layer_norm(x1 + ea, g2, be2)

    # ---- FFN (relu) + residual + norm3 ----
    h1 = jnp.maximum(
        jnp.dot(x2.astype(jnp.bfloat16), wf1_ref[...],
                preferred_element_type=jnp.float32) + bf1_ref[...], 0.0)
    ff = jnp.dot(h1.astype(jnp.bfloat16), wf2_ref[...],
                 preferred_element_type=jnp.float32) + bf2
    x3 = _layer_norm(x2 + ff, g3, be3)

    y_ref[0] = x3


_PACKED_ORDER = ("bq1", "bk1", "bv1", "bo1", "g1", "be1",
                 "bq2", "bk2", "bv2", "bo2", "g2", "be2",
                 "bf2", "g3", "be3")


def _nbytes(shape, itemsize):
    n = 1
    for s in shape:
        n *= s
    return n * itemsize


def transformer_decoder_layer(x, encoder_output, encoder_mask, params, n_heads,
                              tq=None):
    B, T, D = x.shape
    _, S, _ = encoder_output.shape
    dh = D // n_heads
    F = params["wf1"].shape[1]

    # query-tile size: tile T only when the tiles stay (8,128)-aligned
    if tq is None:
        if T % 256 == 0:
            tq = 256
        elif T % 128 == 0:
            tq = 128
        else:
            # TODO(synk): ragged T (cdiv grid + masked tail tile) not implemented
            tq = T
    assert T % tq == 0
    n_tq = T // tq

    x_f32 = x.astype(jnp.float32)
    x_bf16 = x.astype(jnp.bfloat16)          # projection-only copy
    enc_bf16 = encoder_output.astype(jnp.bfloat16)
    enc_mask_f = encoder_mask.astype(jnp.float32).reshape(B, 1, S)

    # bf16 matmul weights (f32 accumulation in-kernel)
    w_names = ("wq1", "wk1", "wv1", "wo1", "wq2", "wk2", "wv2", "wo2",
               "wf1", "wf2")
    w_bf16 = [params[k].astype(jnp.bfloat16) for k in w_names]
    # pack the 15 tiny (1, D) bias / layernorm vectors into one (15, D) input
    pvec = jnp.concatenate(
        [params[k].astype(jnp.float32).reshape(1, D) for k in _PACKED_ORDER],
        axis=0)
    bf1 = params["bf1"].astype(jnp.float32).reshape(1, F)

    def const_spec(arr):
        nd = arr.ndim
        # constant index map + single-buffered: weights stay resident, not
        # double-buffered
        return pl.BlockSpec(arr.shape, lambda b, ti, _nd=nd: (0,) * _nd,
                            pipeline_mode=pl.Buffered(1))

    in_specs = [
        pl.BlockSpec((1, tq, D), lambda b, ti: (b, ti, 0)),   # x  f32 query tile
        pl.BlockSpec((1, T, D), lambda b, ti: (b, 0, 0)),     # x  bf16 full (proj)
        pl.BlockSpec((1, S, D), lambda b, ti: (b, 0, 0)),     # enc bf16
        pl.BlockSpec((1, 1, S), lambda b, ti: (b, 0, 0)),     # enc mask f32
    ] + [const_spec(w) for w in w_bf16] + [const_spec(pvec), const_spec(bf1)]

    out_shape = (
        jax.ShapeDtypeStruct((B, T, D), jnp.float32),    # output x
        jax.ShapeDtypeStruct((B, T, D), jnp.bfloat16),   # self prev_key  (lane-dense)
        jax.ShapeDtypeStruct((B, T, D), jnp.bfloat16),   # self prev_value
        jax.ShapeDtypeStruct((B, S, D), jnp.bfloat16),   # enc  prev_key
        jax.ShapeDtypeStruct((B, S, D), jnp.bfloat16),   # enc  prev_value
    )
    out_specs = (
        pl.BlockSpec((1, tq, D), lambda b, ti: (b, ti, 0)),
        pl.BlockSpec((1, tq, D), lambda b, ti: (b, ti, 0)),
        pl.BlockSpec((1, tq, D), lambda b, ti: (b, ti, 0)),
        pl.BlockSpec((1, S, D), lambda b, ti: (b, 0, 0)),
        pl.BlockSpec((1, S, D), lambda b, ti: (b, 0, 0)),
    )

    # --- VMEM footprint estimate -> vmem_limit (capped below v7x's 64 MiB) ---
    weight_bytes = (sum(_nbytes(w.shape, 2) for w in w_bf16)
                    + _nbytes(pvec.shape, 4) + _nbytes(bf1.shape, 4))
    act_bytes = 2 * (_nbytes((1, tq, D), 4)          # xq f32 (double-buffered)
                     + _nbytes((1, T, D), 2)         # x full bf16
                     + _nbytes((1, S, D), 2)         # enc bf16
                     + _nbytes((1, 1, S), 4)         # mask
                     + _nbytes((1, tq, D), 4)        # y out
                     + 2 * _nbytes((1, tq, D), 2)    # sk, sv out
                     + 2 * _nbytes((1, S, D), 2))    # ek, ev out
    scratch_bytes = 2 * _nbytes((T, D), 2) + 2 * _nbytes((S, D), 2)
    est = weight_bytes + act_bytes + scratch_bytes
    vmem_limit = max(16 << 20, min(56 << 20, int(est * 1.5) + (2 << 20)))

    kernel = functools.partial(decoder_layer_kernel,
                               n_heads=n_heads, dh=dh, tq=tq)

    y, sk, sv, ek, ev = pl.pallas_call(
        kernel,
        out_shape=out_shape,
        grid=(B, n_tq),
        in_specs=in_specs,
        out_specs=out_specs,
        scratch_shapes=[
            pltpu.VMEM((T, D), jnp.bfloat16),   # self-attn K (per batch element)
            pltpu.VMEM((T, D), jnp.bfloat16),   # self-attn V
            pltpu.VMEM((S, D), jnp.bfloat16),   # enc-attn  K
            pltpu.VMEM((S, D), jnp.bfloat16),   # enc-attn  V
        ],
        compiler_params=pltpu.CompilerParams(
            dimension_semantics=("parallel", "arbitrary"),
            vmem_limit_bytes=vmem_limit,
        ),
    )(x_f32, x_bf16, enc_bf16, enc_mask_f, *w_bf16, pvec, bf1)

    def to_heads(t):   # (B, L, D) -> (B, n_heads, L, dh), back to f32 interface dtype
        b_, l_, _ = t.shape
        return t.astype(jnp.float32).reshape(b_, l_, n_heads, dh).transpose(0, 2, 1, 3)

    new_incr_state = {
        "self_attn": {
            "prev_key": to_heads(sk),
            "prev_value": to_heads(sv),
            # causal decoder-mask (same as PyTorch _create_selfattn_mask)
            "prev_mask": jnp.broadcast_to(
                jnp.tril(jnp.ones((T, T), jnp.float32))[None], (B, T, T)),
        },
        "encoder_attn": {
            "prev_key": to_heads(ek),
            "prev_value": to_heads(ev),
            "prev_mask": encoder_mask.astype(jnp.float32),
        },
    }
    return y, new_incr_state


# ----------------------- plain-JAX reference (for checking) -----------------------
def _ref_mha(xq, xkv, mask_block, p, pfx, n_heads):
    D = xq.shape[-1]
    dh = D // n_heads
    scale = math.sqrt(dh)
    q = xq @ p["wq" + pfx] + p["bq" + pfx]
    k = xkv @ p["wk" + pfx] + p["bk" + pfx]
    v = xkv @ p["wv" + pfx] + p["bv" + pfx]

    def heads(t):
        B, L, _ = t.shape
        return t.reshape(B, L, n_heads, dh).transpose(0, 2, 1, 3)

    qh, kh, vh = heads(q) / scale, heads(k), heads(v)
    dot = jnp.einsum("bhtd,bhsd->bhts", qh, kh)
    dot = jnp.where(mask_block, NEG_INF, dot)
    w = jax.nn.softmax(dot, axis=-1)
    att = jnp.einsum("bhts,bhsd->bhtd", w, vh)
    att = att.transpose(0, 2, 1, 3).reshape(xq.shape[0], xq.shape[1], D)
    return att @ p["wo" + pfx] + p["bo" + pfx]


def _ref_ln(x, g, b):
    mu = x.mean(-1, keepdims=True)
    var = ((x - mu) ** 2).mean(-1, keepdims=True)
    return (x - mu) / jnp.sqrt(var + LAYER_NORM_EPS) * g + b


def reference_layer(x, enc, enc_mask, p, n_heads):
    B, T, D = x.shape
    causal = jnp.triu(jnp.ones((T, T), bool), k=1)[None, None]          # True = block
    sa = _ref_mha(x, x, causal, p, "1", n_heads)
    x1 = _ref_ln(sa + x, p["g1"], p["be1"])
    eb = (enc_mask == 0)[:, None, None, :]
    ea = _ref_mha(x1, enc, eb, p, "2", n_heads)
    x2 = _ref_ln(x1 + ea, p["g2"], p["be2"])
    ff = jnp.maximum(x2 @ p["wf1"] + p["bf1"], 0.0) @ p["wf2"] + p["bf2"]
    return _ref_ln(x2 + ff, p["g3"], p["be3"])


# ----------------------------------- main -----------------------------------------
if __name__ == "__main__":
    B, T, S, D, F, H = 2, 8, 8, 32, 64, 4
    dh = D // H

    key = jax.random.PRNGKey(0)
    keys = jax.random.split(key, 32)
    ki = iter(keys)

    def w(shape, scale=0.1):
        return jax.random.normal(next(ki), shape, jnp.float32) * scale

    params = {}
    for pfx in ("1", "2"):  # 1 = self-attn, 2 = encoder-attn
        for name in ("q", "k", "v", "o"):
            params[f"w{name}{pfx}"] = w((D, D))          # stored as (in, out)
            params[f"b{name}{pfx}"] = w((1, D), 0.02)
        params[f"g{pfx}"] = jnp.ones((1, D), jnp.float32)
        params[f"be{pfx}"] = jnp.zeros((1, D), jnp.float32)
    params["wf1"] = w((D, F)); params["bf1"] = w((1, F), 0.02)
    params["wf2"] = w((F, D)); params["bf2"] = w((1, D), 0.02)
    params["g3"] = jnp.ones((1, D), jnp.float32)
    params["be3"] = jnp.zeros((1, D), jnp.float32)

    x = jax.random.normal(next(ki), (B, T, D), jnp.float32)
    encoder_output = jax.random.normal(next(ki), (B, S, D), jnp.float32)
    # encoder mask: 1 = attend, last two positions of batch 1 padded out
    encoder_mask = jnp.ones((B, S), jnp.float32).at[1, S - 2:].set(0.0)

    y, incr = transformer_decoder_layer(x, encoder_output, encoder_mask, params, H)
    y = jax.block_until_ready(y)

    # kernel uses bf16 matmul operands with f32 accumulation -> compare against
    # a pure-f32 reference with a correspondingly relaxed tolerance.
    y_ref = reference_layer(x, encoder_output, encoder_mask, params, H)
    assert jnp.allclose(y, y_ref, atol=5e-2, rtol=5e-2), "output mismatch vs reference"

    ref_sk = (x @ params["wk1"] + params["bk1"]).reshape(B, T, H, dh).transpose(0, 2, 1, 3)
    ref_ek = (encoder_output @ params["wk2"] + params["bk2"]).reshape(B, S, H, dh).transpose(0, 2, 1, 3)
    assert jnp.allclose(incr["self_attn"]["prev_key"], ref_sk, atol=2e-2, rtol=2e-2)
    assert jnp.allclose(incr["encoder_attn"]["prev_key"], ref_ek, atol=2e-2, rtol=2e-2)

    # TODO(synk): incremental-state decoding (consuming incr_state inputs /
    # static_kv reuse) is not exercised; only the incr_state *outputs* are produced.
    print("KERNEL_OK")
</pallas_src>

<mosaic_0001>
module attributes {stable_mosaic.version = 11 : i64} {
  func.func @decoder_layer_kernel(%arg0: i32, %arg1: i32, %arg2: memref<1x8x32xf32, #tpu.memory_space<vmem>>, %arg3: memref<1x8x32xbf16, #tpu.memory_space<vmem>>, %arg4: memref<1x8x32xbf16, #tpu.memory_space<vmem>>, %arg5: memref<1x1x8xf32, #tpu.memory_space<vmem>>, %arg6: memref<32x32xbf16, #tpu.memory_space<vmem>>, %arg7: memref<32x32xbf16, #tpu.memory_space<vmem>>, %arg8: memref<32x32xbf16, #tpu.memory_space<vmem>>, %arg9: memref<32x32xbf16, #tpu.memory_space<vmem>>, %arg10: memref<32x32xbf16, #tpu.memory_space<vmem>>, %arg11: memref<32x32xbf16, #tpu.memory_space<vmem>>, %arg12: memref<32x32xbf16, #tpu.memory_space<vmem>>, %arg13: memref<32x32xbf16, #tpu.memory_space<vmem>>, %arg14: memref<32x64xbf16, #tpu.memory_space<vmem>>, %arg15: memref<64x32xbf16, #tpu.memory_space<vmem>>, %arg16: memref<15x32xf32, #tpu.memory_space<vmem>>, %arg17: memref<1x64xf32, #tpu.memory_space<vmem>>, %arg18: memref<1x8x32xf32, #tpu.memory_space<vmem>>, %arg19: memref<1x8x32xbf16, #tpu.memory_space<vmem>>, %arg20: memref<1x8x32xbf16, #tpu.memory_space<vmem>>, %arg21: memref<1x8x32xbf16, #tpu.memory_space<vmem>>, %arg22: memref<1x8x32xbf16, #tpu.memory_space<vmem>>, %arg23: memref<8x32xbf16, #tpu.memory_space<vmem>>, %arg24: memref<8x32xbf16, #tpu.memory_space<vmem>>, %arg25: memref<8x32xbf16, #tpu.memory_space<vmem>>, %arg26: memref<8x32xbf16, #tpu.memory_space<vmem>>) attributes {dimension_semantics = [#tpu.dimension_semantics<parallel>, #tpu.dimension_semantics<arbitrary>], iteration_bounds = array<i64: 2, 1>, scalar_prefetch = 0 : i64, scratch_operands = 4 : i64, tpu.core_type = #tpu.core_type<tc>, window_params = [{transform_indices = @transform_0, window_bounds = array<i64: 1, 8, 32>}, {transform_indices = @transform_1, window_bounds = array<i64: 1, 8, 32>}, {transform_indices = @transform_2, window_bounds = array<i64: 1, 8, 32>}, {transform_indices = @transform_3, window_bounds = array<i64: 1, 1, 8>}, {pipeline_mode = #tpu.pipeline_mode<synchronous>, transform_indices = @transform_4, window_bounds = array<i64: 32, 32>}, {pipeline_mode = #tpu.pipeline_mode<synchronous>, transform_indices = @transform_5, window_bounds = array<i64: 32, 32>}, {pipeline_mode = #tpu.pipeline_mode<synchronous>, transform_indices = @transform_6, window_bounds = array<i64: 32, 32>}, {pipeline_mode = #tpu.pipeline_mode<synchronous>, transform_indices = @transform_7, window_bounds = array<i64: 32, 32>}, {pipeline_mode = #tpu.pipeline_mode<synchronous>, transform_indices = @transform_8, window_bounds = array<i64: 32, 32>}, {pipeline_mode = #tpu.pipeline_mode<synchronous>, transform_indices = @transform_9, window_bounds = array<i64: 32, 32>}, {pipeline_mode = #tpu.pipeline_mode<synchronous>, transform_indices = @transform_10, window_bounds = array<i64: 32, 32>}, {pipeline_mode = #tpu.pipeline_mode<synchronous>, transform_indices = @transform_11, window_bounds = array<i64: 32, 32>}, {pipeline_mode = #tpu.pipeline_mode<synchronous>, transform_indices = @transform_12, window_bounds = array<i64: 32, 64>}, {pipeline_mode = #tpu.pipeline_mode<synchronous>, transform_indices = @transform_13, window_bounds = array<i64: 64, 32>}, {pipeline_mode = #tpu.pipeline_mode<synchronous>, transform_indices = @transform_14, window_bounds = array<i64: 15, 32>}, {pipeline_mode = #tpu.pipeline_mode<synchronous>, transform_indices = @transform_15, window_bounds = array<i64: 1, 64>}, {transform_indices = @transform_16, window_bounds = array<i64: 1, 8, 32>}, {transform_indices = @transform_17, window_bounds = array<i64: 1, 8, 32>}, {transform_indices = @transform_18, window_bounds = array<i64: 1, 8, 32>}, {transform_indices = @transform_19, window_bounds = array<i64: 1, 8, 32>}, {transform_indices = @transform_20, window_bounds = array<i64: 1, 8, 32>}]} {
    %c8_i32 = arith.constant 8 : i32
    %0 = arith.muli %arg1, %c8_i32 : i32
    %1 = tpu.assume_multiple %0, 8 : i32
    %c0 = arith.constant 0 : index
    %c0_0 = arith.constant 0 : index
    %2 = vector.load %arg16[%c0, %c0_0] : memref<15x32xf32, #tpu.memory_space<vmem>>, vector<15x32xf32>
    %3 = vector.extract_strided_slice %2 {offsets = [0, 0], sizes = [1, 32], strides = [1, 1]} : vector<15x32xf32> to vector<1x32xf32>
    %4 = vector.extract_strided_slice %2 {offsets = [1, 0], sizes = [1, 32], strides = [1, 1]} : vector<15x32xf32> to vector<1x32xf32>
    %5 = vector.extract_strided_slice %2 {offsets = [2, 0], sizes = [1, 32], strides = [1, 1]} : vector<15x32xf32> to vector<1x32xf32>
    %6 = vector.extract_strided_slice %2 {offsets = [3, 0], sizes = [1, 32], strides = [1, 1]} : vector<15x32xf32> to vector<1x32xf32>
    %7 = vector.extract_strided_slice %2 {offsets = [4, 0], sizes = [1, 32], strides = [1, 1]} : vector<15x32xf32> to vector<1x32xf32>
    %8 = vector.extract_strided_slice %2 {offsets = [5, 0], sizes = [1, 32], strides = [1, 1]} : vector<15x32xf32> to vector<1x32xf32>
    %9 = vector.extract_strided_slice %2 {offsets = [6, 0], sizes = [1, 32], strides = [1, 1]} : vector<15x32xf32> to vector<1x32xf32>
    %10 = vector.extract_strided_slice %2 {offsets = [7, 0], sizes = [1, 32], strides = [1, 1]} : vector<15x32xf32> to vector<1x32xf32>
    %11 = vector.extract_strided_slice %2 {offsets = [8, 0], sizes = [1, 32], strides = [1, 1]} : vector<15x32xf32> to vector<1x32xf32>
    %12 = vector.extract_strided_slice %2 {offsets = [9, 0], sizes = [1, 32], strides = [1, 1]} : vector<15x32xf32> to vector<1x32xf32>
    %13 = vector.extract_strided_slice %2 {offsets = [10, 0], sizes = [1, 32], strides = [1, 1]} : vector<15x32xf32> to vector<1x32xf32>
    %14 = vector.extract_strided_slice %2 {offsets = [11, 0], sizes = [1, 32], strides = [1, 1]} : vector<15x32xf32> to vector<1x32xf32>
    %15 = vector.extract_strided_slice %2 {offsets = [12, 0], sizes = [1, 32], strides = [1, 1]} : vector<15x32xf32> to vector<1x32xf32>
    %16 = vector.extract_strided_slice %2 {offsets = [13, 0], sizes = [1, 32], strides = [1, 1]} : vector<15x32xf32> to vector<1x32xf32>
    %17 = vector.extract_strided_slice %2 {offsets = [14, 0], sizes = [1, 32], strides = [1, 1]} : vector<15x32xf32> to vector<1x32xf32>
    %c0_i32 = arith.constant 0 : i32
    %18 = arith.cmpi eq, %arg1, %c0_i32 : i32
    %19 = arith.extui %18 : i1 to i32
    %c0_i32_1 = arith.constant 0 : i32
    %20 = arith.cmpi ne, %19, %c0_i32_1 : i32
    scf.if %20 {
      %c0_105 = arith.constant 0 : index
      %c0_106 = arith.constant 0 : index
      %c0_107 = arith.constant 0 : index
      %311 = vector.load %arg3[%c0_105, %c0_106, %c0_107] : memref<1x8x32xbf16, #tpu.memory_space<vmem>>, vector<1x8x32xbf16>
      %312 = vector.shape_cast %311 : vector<1x8x32xbf16> to vector<8x32xbf16>
      %c0_108 = arith.constant 0 : index
      %c0_109 = arith.constant 0 : index
      %313 = vector.load %arg7[%c0_108, %c0_109] : memref<32x32xbf16, #tpu.memory_space<vmem>>, vector<32x32xbf16>
      %cst_110 = arith.constant dense<0.000000e+00> : vector<8x32xf32>
      %314 = tpu.matmul %312, %313, %cst_110 {dimension_numbers = #tpu.dot_dimension_numbers<[1], [0], [0], [1], [0, 0, 1, 1], [], []>} : vector<8x32xbf16>, vector<32x32xbf16>, vector<8x32xf32> -> vector<8x32xf32>
      %315 = vector.broadcast %4 : vector<1x32xf32> to vector<8x32xf32>
      %316 = arith.addf %314, %315 : vector<8x32xf32>
      %c0_111 = arith.constant 0 : index
      %c0_112 = arith.constant 0 : index
      %317 = vector.load %arg8[%c0_111, %c0_112] : memref<32x32xbf16, #tpu.memory_space<vmem>>, vector<32x32xbf16>
      %cst_113 = arith.constant dense<0.000000e+00> : vector<8x32xf32>
      %318 = tpu.matmul %312, %317, %cst_113 {dimension_numbers = #tpu.dot_dimension_numbers<[1], [0], [0], [1], [0, 0, 1, 1], [], []>} : vector<8x32xbf16>, vector<32x32xbf16>, vector<8x32xf32> -> vector<8x32xf32>
      %319 = vector.broadcast %5 : vector<1x32xf32> to vector<8x32xf32>
      %320 = arith.addf %318, %319 : vector<8x32xf32>
      %321 = arith.truncf %316 : vector<8x32xf32> to vector<8x32xbf16>
      %c0_114 = arith.constant 0 : index
      %c0_115 = arith.constant 0 : index
      %322 = vector.load %arg23[%c0_114, %c0_115] : memref<8x32xbf16, #tpu.memory_space<vmem>>, vector<8x32xbf16>
      tpu.vector_store %arg23[%c0_114, %c0_115], %321 {strides = array<i32>} : memref<8x32xbf16, #tpu.memory_space<vmem>>, vector<8x32xbf16>,
      %323 = arith.truncf %320 : vector<8x32xf32> to vector<8x32xbf16>
      %c0_116 = arith.constant 0 : index
      %c0_117 = arith.constant 0 : index
      %324 = vector.load %arg24[%c0_116, %c0_117] : memref<8x32xbf16, #tpu.memory_space<vmem>>, vector<8x32xbf16>
      tpu.vector_store %arg24[%c0_116, %c0_117], %323 {strides = array<i32>} : memref<8x32xbf16, #tpu.memory_space<vmem>>, vector<8x32xbf16>,
      %c0_118 = arith.constant 0 : index
      %c0_119 = arith.constant 0 : index
      %c0_120 = arith.constant 0 : index
      %325 = vector.load %arg4[%c0_118, %c0_119, %c0_120] : memref<1x8x32xbf16, #tpu.memory_space<vmem>>, vector<1x8x32xbf16>
      %326 = vector.shape_cast %325 : vector<1x8x32xbf16> to vector<8x32xbf16>
      %c0_121 = arith.constant 0 : index
      %c0_122 = arith.constant 0 : index
      %327 = vector.load %arg11[%c0_121, %c0_122] : memref<32x32xbf16, #tpu.memory_space<vmem>>, vector<32x32xbf16>
      %cst_123 = arith.constant dense<0.000000e+00> : vector<8x32xf32>
      %328 = tpu.matmul %326, %327, %cst_123 {dimension_numbers = #tpu.dot_dimension_numbers<[1], [0], [0], [1], [0, 0, 1, 1], [], []>} : vector<8x32xbf16>, vector<32x32xbf16>, vector<8x32xf32> -> vector<8x32xf32>
      %329 = vector.broadcast %10 : vector<1x32xf32> to vector<8x32xf32>
      %330 = arith.addf %328, %329 : vector<8x32xf32>
      %c0_124 = arith.constant 0 : index
      %c0_125 = arith.constant 0 : index
      %331 = vector.load %arg12[%c0_124, %c0_125] : memref<32x32xbf16, #tpu.memory_space<vmem>>, vector<32x32xbf16>
      %cst_126 = arith.constant dense<0.000000e+00> : vector<8x32xf32>
      %332 = tpu.matmul %326, %331, %cst_126 {dimension_numbers = #tpu.dot_dimension_numbers<[1], [0], [0], [1], [0, 0, 1, 1], [], []>} : vector<8x32xbf16>, vector<32x32xbf16>, vector<8x32xf32> -> vector<8x32xf32>
      %333 = vector.broadcast %11 : vector<1x32xf32> to vector<8x32xf32>
      %334 = arith.addf %332, %333 : vector<8x32xf32>
      %335 = arith.truncf %330 : vector<8x32xf32> to vector<8x32xbf16>
      %336 = arith.truncf %334 : vector<8x32xf32> to vector<8x32xbf16>
      %c0_127 = arith.constant 0 : index
      %c0_128 = arith.constant 0 : index
      %337 = vector.load %arg25[%c0_127, %c0_128] : memref<8x32xbf16, #tpu.memory_space<vmem>>, vector<8x32xbf16>
      tpu.vector_store %arg25[%c0_127, %c0_128], %335 {strides = array<i32>} : memref<8x32xbf16, #tpu.memory_space<vmem>>, vector<8x32xbf16>,
      %c0_129 = arith.constant 0 : index
      %c0_130 = arith.constant 0 : index
      %338 = vector.load %arg26[%c0_129, %c0_130] : memref<8x32xbf16, #tpu.memory_space<vmem>>, vector<8x32xbf16>
      tpu.vector_store %arg26[%c0_129, %c0_130], %336 {strides = array<i32>} : memref<8x32xbf16, #tpu.memory_space<vmem>>, vector<8x32xbf16>,
      %c0_131 = arith.constant 0 : index
      %c0_132 = arith.constant 0 : index
      %c0_133 = arith.constant 0 : index
      %339 = vector.load %arg21[%c0_131, %c0_132, %c0_133] : memref<1x8x32xbf16, #tpu.memory_space<vmem>>, vector<1x8x32xbf16>
      %340 = vector.shape_cast %339 : vector<1x8x32xbf16> to vector<8x32xbf16>
      %341 = vector.shape_cast %335 : vector<8x32xbf16> to vector<1x8x32xbf16>
      tpu.vector_store %arg21[%c0_131, %c0_132, %c0_133], %341 {strides = array<i32>} : memref<1x8x32xbf16, #tpu.memory_space<vmem>>, vector<1x8x32xbf16>,
      %c0_134 = arith.constant 0 : index
      %c0_135 = arith.constant 0 : index
      %c0_136 = arith.constant 0 : index
      %342 = vector.load %arg22[%c0_134, %c0_135, %c0_136] : memref<1x8x32xbf16, #tpu.memory_space<vmem>>, vector<1x8x32xbf16>
      %343 = vector.shape_cast %342 : vector<1x8x32xbf16> to vector<8x32xbf16>
      %344 = vector.shape_cast %336 : vector<8x32xbf16> to vector<1x8x32xbf16>
      tpu.vector_store %arg22[%c0_134, %c0_135, %c0_136], %344 {strides = array<i32>} : memref<1x8x32xbf16, #tpu.memory_space<vmem>>, vector<1x8x32xbf16>,
    } else {
    }
    %21 = arith.index_cast %1 : i32 to index
    %c0_2 = arith.constant 0 : index
    %22 = vector.load %arg23[%21, %c0_2] : memref<8x32xbf16, #tpu.memory_space<vmem>>, vector<8x32xbf16>
    %c0_3 = arith.constant 0 : index
    %c0_4 = arith.constant 0 : index
    %c0_5 = arith.constant 0 : index
    %23 = vector.load %arg19[%c0_3, %c0_4, %c0_5] : memref<1x8x32xbf16, #tpu.memory_space<vmem>>, vector<1x8x32xbf16>
    %24 = vector.shape_cast %23 : vector<1x8x32xbf16> to vector<8x32xbf16>
    %25 = vector.shape_cast %22 : vector<8x32xbf16> to vector<1x8x32xbf16>
    tpu.vector_store %arg19[%c0_3, %c0_4, %c0_5], %25 {strides = array<i32>} : memref<1x8x32xbf16, #tpu.memory_space<vmem>>, vector<1x8x32xbf16>,
    %26 = arith.index_cast %1 : i32 to index
    %c0_6 = arith.constant 0 : index
    %27 = vector.load %arg24[%26, %c0_6] : memref<8x32xbf16, #tpu.memory_space<vmem>>, vector<8x32xbf16>
    %c0_7 = arith.constant 0 : index
    %c0_8 = arith.constant 0 : index
    %c0_9 = arith.constant 0 : index
    %28 = vector.load %arg20[%c0_7, %c0_8, %c0_9] : memref<1x8x32xbf16, #tpu.memory_space<vmem>>, vector<1x8x32xbf16>
    %29 = vector.shape_cast %28 : vector<1x8x32xbf16> to vector<8x32xbf16>
    %30 = vector.shape_cast %27 : vector<8x32xbf16> to vector<1x8x32xbf16>
    tpu.vector_store %arg20[%c0_7, %c0_8, %c0_9], %30 {strides = array<i32>} : memref<1x8x32xbf16, #tpu.memory_space<vmem>>, vector<1x8x32xbf16>,
    %c0_10 = arith.constant 0 : index
    %c0_11 = arith.constant 0 : index
    %c0_12 = arith.constant 0 : index
    %31 = vector.load %arg2[%c0_10, %c0_11, %c0_12] : memref<1x8x32xf32, #tpu.memory_space<vmem>>, vector<1x8x32xf32>
    %32 = vector.shape_cast %31 : vector<1x8x32xf32> to vector<8x32xf32>
    %33 = arith.truncf %32 : vector<8x32xf32> to vector<8x32xbf16>
    %c0_13 = arith.constant 0 : index
    %c0_14 = arith.constant 0 : index
    %34 = vector.load %arg6[%c0_13, %c0_14] : memref<32x32xbf16, #tpu.memory_space<vmem>>, vector<32x32xbf16>
    %cst = arith.constant dense<0.000000e+00> : vector<8x32xf32>
    %35 = tpu.matmul %33, %34, %cst {dimension_numbers = #tpu.dot_dimension_numbers<[1], [0], [0], [1], [0, 0, 1, 1], [], []>} : vector<8x32xbf16>, vector<32x32xbf16>, vector<8x32xf32> -> vector<8x32xf32>
    %36 = vector.broadcast %3 : vector<1x32xf32> to vector<8x32xf32>
    %37 = arith.addf %35, %36 : vector<8x32xf32>
    %cst_15 = arith.constant 0.353553385 : f32
    %38 = vector.broadcast %cst_15 : f32 to vector<8x32xf32>
    %39 = arith.mulf %37, %38 : vector<8x32xf32>
    %40 = tpu.iota {dimensions = array<i32: 0>} : vector<8x8xi32>
    %41 = vector.broadcast %1 : i32 to vector<8x8xi32>
    %42 = arith.addi %40, %41 : vector<8x8xi32>
    %43 = tpu.iota {dimensions = array<i32: 1>} : vector<8x8xi32>
    %44 = arith.cmpi sgt, %43, %42 : vector<8x8xi32>
    %c0_16 = arith.constant 0 : index
    %c0_17 = arith.constant 0 : index
    %45 = vector.load %arg23[%c0_16, %c0_17] : memref<8x32xbf16, #tpu.memory_space<vmem>>, vector<8x32xbf16>
    %c0_18 = arith.constant 0 : index
    %c0_19 = arith.constant 0 : index
    %46 = vector.load %arg24[%c0_18, %c0_19] : memref<8x32xbf16, #tpu.memory_space<vmem>>, vector<8x32xbf16>
    %47 = arith.truncf %39 : vector<8x32xf32> to vector<8x32xbf16>
    %48 = vector.extract_strided_slice %47 {offsets = [0, 0], sizes = [8, 8], strides = [1, 1]} : vector<8x32xbf16> to vector<8x8xbf16>
    %49 = vector.extract_strided_slice %45 {offsets = [0, 0], sizes = [8, 8], strides = [1, 1]} : vector<8x32xbf16> to vector<8x8xbf16>
    %cst_20 = arith.constant dense<0.000000e+00> : vector<8x8xf32>
    %50 = tpu.matmul %48, %49, %cst_20 {dimension_numbers = #tpu.dot_dimension_numbers<[1], [1], [0], [0], [0, 0, 1, 0], [], []>} : vector<8x8xbf16>, vector<8x8xbf16>, vector<8x8xf32> -> vector<8x8xf32>
    %cst_21 = arith.constant -1.000000e+20 : f32
    %51 = vector.broadcast %cst_21 : f32 to vector<8x8xf32>
    %52 = arith.select %44, %51, %50 : vector<8x8xi1>, vector<8x8xf32>
    %cst_22 = arith.constant dense<0xFF800000> : vector<8xf32>
    %53 = vector.multi_reduction <maximumf>, %52, %cst_22 [1] : vector<8x8xf32> to vector<8xf32>
    %54 = vector.shape_cast %53 : vector<8xf32> to vector<8x1xf32>
    %55 = vector.broadcast %54 : vector<8x1xf32> to vector<8x8xf32>
    %56 = arith.subf %52, %55 : vector<8x8xf32>
    %57 = math.exp %56 : vector<8x8xf32>
    %cst_23 = arith.constant dense<0.000000e+00> : vector<8xf32>
    %58 = vector.multi_reduction <add>, %57, %cst_23 [1] : vector<8x8xf32> to vector<8xf32>
    %59 = vector.shape_cast %58 : vector<8xf32> to vector<8x1xf32>
    %60 = tpu.reciprocal %59 {approx = true} : vector<8x1xf32> -> vector<8x1xf32>
    %61 = vector.broadcast %60 : vector<8x1xf32> to vector<8x8xf32>
    %62 = arith.mulf %57, %61 : vector<8x8xf32>
    %63 = arith.truncf %62 : vector<8x8xf32> to vector<8x8xbf16>
    %64 = vector.extract_strided_slice %46 {offsets = [0, 0], sizes = [8, 8], strides = [1, 1]} : vector<8x32xbf16> to vector<8x8xbf16>
    %cst_24 = arith.constant dense<0.000000e+00> : vector<8x8xf32>
    %65 = tpu.matmul %63, %64, %cst_24 {dimension_numbers = #tpu.dot_dimension_numbers<[1], [0], [0], [1], [0, 0, 1, 1], [], []>} : vector<8x8xbf16>, vector<8x8xbf16>, vector<8x8xf32> -> vector<8x8xf32>
    %66 = arith.truncf %65 : vector<8x8xf32> to vector<8x8xbf16>
    %67 = vector.extract_strided_slice %47 {offsets = [0, 8], sizes = [8, 8], strides = [1, 1]} : vector<8x32xbf16> to vector<8x8xbf16>
    %68 = vector.extract_strided_slice %45 {offsets = [0, 8], sizes = [8, 8], strides = [1, 1]} : vector<8x32xbf16> to vector<8x8xbf16>
    %cst_25 = arith.constant dense<0.000000e+00> : vector<8x8xf32>
    %69 = tpu.matmul %67, %68, %cst_25 {dimension_numbers = #tpu.dot_dimension_numbers<[1], [1], [0], [0], [0, 0, 1, 0], [], []>} : vector<8x8xbf16>, vector<8x8xbf16>, vector<8x8xf32> -> vector<8x8xf32>
    %cst_26 = arith.constant -1.000000e+20 : f32
    %70 = vector.broadcast %cst_26 : f32 to vector<8x8xf32>
    %71 = arith.select %44, %70, %69 : vector<8x8xi1>, vector<8x8xf32>
    %cst_27 = arith.constant dense<0xFF800000> : vector<8xf32>
    %72 = vector.multi_reduction <maximumf>, %71, %cst_27 [1] : vector<8x8xf32> to vector<8xf32>
    %73 = vector.shape_cast %72 : vector<8xf32> to vector<8x1xf32>
    %74 = vector.broadcast %73 : vector<8x1xf32> to vector<8x8xf32>
    %75 = arith.subf %71, %74 : vector<8x8xf32>
    %76 = math.exp %75 : vector<8x8xf32>
    %cst_28 = arith.constant dense<0.000000e+00> : vector<8xf32>
    %77 = vector.multi_reduction <add>, %76, %cst_28 [1] : vector<8x8xf32> to vector<8xf32>
    %78 = vector.shape_cast %77 : vector<8xf32> to vector<8x1xf32>
    %79 = tpu.reciprocal %78 {approx = true} : vector<8x1xf32> -> vector<8x1xf32>
    %80 = vector.broadcast %79 : vector<8x1xf32> to vector<8x8xf32>
    %81 = arith.mulf %76, %80 : vector<8x8xf32>
    %82 = arith.truncf %81 : vector<8x8xf32> to vector<8x8xbf16>
    %83 = vector.extract_strided_slice %46 {offsets = [0, 8], sizes = [8, 8], strides = [1, 1]} : vector<8x32xbf16> to vector<8x8xbf16>
    %cst_29 = arith.constant dense<0.000000e+00> : vector<8x8xf32>
    %84 = tpu.matmul %82, %83, %cst_29 {dimension_numbers = #tpu.dot_dimension_numbers<[1], [0], [0], [1], [0, 0, 1, 1], [], []>} : vector<8x8xbf16>, vector<8x8xbf16>, vector<8x8xf32> -> vector<8x8xf32>
    %85 = arith.truncf %84 : vector<8x8xf32> to vector<8x8xbf16>
    %86 = vector.extract_strided_slice %47 {offsets = [0, 16], sizes = [8, 8], strides = [1, 1]} : vector<8x32xbf16> to vector<8x8xbf16>
    %87 = vector.extract_strided_slice %45 {offsets = [0, 16], sizes = [8, 8], strides = [1, 1]} : vector<8x32xbf16> to vector<8x8xbf16>
    %cst_30 = arith.constant dense<0.000000e+00> : vector<8x8xf32>
    %88 = tpu.matmul %86, %87, %cst_30 {dimension_numbers = #tpu.dot_dimension_numbers<[1], [1], [0], [0], [0, 0, 1, 0], [], []>} : vector<8x8xbf16>, vector<8x8xbf16>, vector<8x8xf32> -> vector<8x8xf32>
    %cst_31 = arith.constant -1.000000e+20 : f32
    %89 = vector.broadcast %cst_31 : f32 to vector<8x8xf32>
    %90 = arith.select %44, %89, %88 : vector<8x8xi1>, vector<8x8xf32>
    %cst_32 = arith.constant dense<0xFF800000> : vector<8xf32>
    %91 = vector.multi_reduction <maximumf>, %90, %cst_32 [1] : vector<8x8xf32> to vector<8xf32>
    %92 = vector.shape_cast %91 : vector<8xf32> to vector<8x1xf32>
    %93 = vector.broadcast %92 : vector<8x1xf32> to vector<8x8xf32>
    %94 = arith.subf %90, %93 : vector<8x8xf32>
    %95 = math.exp %94 : vector<8x8xf32>
    %cst_33 = arith.constant dense<0.000000e+00> : vector<8xf32>
    %96 = vector.multi_reduction <add>, %95, %cst_33 [1] : vector<8x8xf32> to vector<8xf32>
    %97 = vector.shape_cast %96 : vector<8xf32> to vector<8x1xf32>
    %98 = tpu.reciprocal %97 {approx = true} : vector<8x1xf32> -> vector<8x1xf32>
    %99 = vector.broadcast %98 : vector<8x1xf32> to vector<8x8xf32>
    %100 = arith.mulf %95, %99 : vector<8x8xf32>
    %101 = arith.truncf %100 : vector<8x8xf32> to vector<8x8xbf16>
    %102 = vector.extract_strided_slice %46 {offsets = [0, 16], sizes = [8, 8], strides = [1, 1]} : vector<8x32xbf16> to vector<8x8xbf16>
    %cst_34 = arith.constant dense<0.000000e+00> : vector<8x8xf32>
    %103 = tpu.matmul %101, %102, %cst_34 {dimension_numbers = #tpu.dot_dimension_numbers<[1], [0], [0], [1], [0, 0, 1, 1], [], []>} : vector<8x8xbf16>, vector<8x8xbf16>, vector<8x8xf32> -> vector<8x8xf32>
    %104 = arith.truncf %103 : vector<8x8xf32> to vector<8x8xbf16>
    %105 = vector.extract_strided_slice %47 {offsets = [0, 24], sizes = [8, 8], strides = [1, 1]} : vector<8x32xbf16> to vector<8x8xbf16>
    %106 = vector.extract_strided_slice %45 {offsets = [0, 24], sizes = [8, 8], strides = [1, 1]} : vector<8x32xbf16> to vector<8x8xbf16>
    %cst_35 = arith.constant dense<0.000000e+00> : vector<8x8xf32>
    %107 = tpu.matmul %105, %106, %cst_35 {dimension_numbers = #tpu.dot_dimension_numbers<[1], [1], [0], [0], [0, 0, 1, 0], [], []>} : vector<8x8xbf16>, vector<8x8xbf16>, vector<8x8xf32> -> vector<8x8xf32>
    %cst_36 = arith.constant -1.000000e+20 : f32
    %108 = vector.broadcast %cst_36 : f32 to vector<8x8xf32>
    %109 = arith.select %44, %108, %107 : vector<8x8xi1>, vector<8x8xf32>
    %cst_37 = arith.constant dense<0xFF800000> : vector<8xf32>
    %110 = vector.multi_reduction <maximumf>, %109, %cst_37 [1] : vector<8x8xf32> to vector<8xf32>
    %111 = vector.shape_cast %110 : vector<8xf32> to vector<8x1xf32>
    %112 = vector.broadcast %111 : vector<8x1xf32> to vector<8x8xf32>
    %113 = arith.subf %109, %112 : vector<8x8xf32>
    %114 = math.exp %113 : vector<8x8xf32>
    %cst_38 = arith.constant dense<0.000000e+00> : vector<8xf32>
    %115 = vector.multi_reduction <add>, %114, %cst_38 [1] : vector<8x8xf32> to vector<8xf32>
    %116 = vector.shape_cast %115 : vector<8xf32> to vector<8x1xf32>
    %117 = tpu.reciprocal %116 {approx = true} : vector<8x1xf32> -> vector<8x1xf32>
    %118 = vector.broadcast %117 : vector<8x1xf32> to vector<8x8xf32>
    %119 = arith.mulf %114, %118 : vector<8x8xf32>
    %120 = arith.truncf %119 : vector<8x8xf32> to vector<8x8xbf16>
    %121 = vector.extract_strided_slice %46 {offsets = [0, 24], sizes = [8, 8], strides = [1, 1]} : vector<8x32xbf16> to vector<8x8xbf16>
    %cst_39 = arith.constant dense<0.000000e+00> : vector<8x8xf32>
    %122 = tpu.matmul %120, %121, %cst_39 {dimension_numbers = #tpu.dot_dimension_numbers<[1], [0], [0], [1], [0, 0, 1, 1], [], []>} : vector<8x8xbf16>, vector<8x8xbf16>, vector<8x8xf32> -> vector<8x8xf32>
    %123 = arith.truncf %122 : vector<8x8xf32> to vector<8x8xbf16>
    %124 = tpu.concatenate %66, %85, %104, %123 in 1 : vector<8x8xbf16>, vector<8x8xbf16>, vector<8x8xbf16>, vector<8x8xbf16> -> vector<8x32xbf16>
    %c0_40 = arith.constant 0 : index
    %c0_41 = arith.constant 0 : index
    %125 = vector.load %arg9[%c0_40, %c0_41] : memref<32x32xbf16, #tpu.memory_space<vmem>>, vector<32x32xbf16>
    %cst_42 = arith.constant dense<0.000000e+00> : vector<8x32xf32>
    %126 = tpu.matmul %124, %125, %cst_42 {dimension_numbers = #tpu.dot_dimension_numbers<[1], [0], [0], [1], [0, 0, 1, 1], [], []>} : vector<8x32xbf16>, vector<32x32xbf16>, vector<8x32xf32> -> vector<8x32xf32>
    %127 = vector.broadcast %6 : vector<1x32xf32> to vector<8x32xf32>
    %128 = arith.addf %126, %127 : vector<8x32xf32>
    %129 = arith.addf %128, %32 : vector<8x32xf32>
    %cst_43 = arith.constant dense<0.000000e+00> : vector<8xf32>
    %130 = vector.multi_reduction <add>, %129, %cst_43 [1] : vector<8x32xf32> to vector<8xf32>
    %131 = vector.shape_cast %130 : vector<8xf32> to vector<8x1xf32>
    %cst_44 = arith.constant 3.200000e+01 : f32
    %132 = vector.broadcast %cst_44 : f32 to vector<8x1xf32>
    %133 = arith.divf %131, %132 : vector<8x1xf32>
    %134 = vector.broadcast %133 : vector<8x1xf32> to vector<8x32xf32>
    %135 = arith.subf %129, %134 : vector<8x32xf32>
    %136 = arith.mulf %135, %135 : vector<8x32xf32>
    %cst_45 = arith.constant dense<0.000000e+00> : vector<8xf32>
    %137 = vector.multi_reduction <add>, %136, %cst_45 [1] : vector<8x32xf32> to vector<8xf32>
    %138 = vector.shape_cast %137 : vector<8xf32> to vector<8x1xf32>
    %cst_46 = arith.constant 3.200000e+01 : f32
    %139 = vector.broadcast %cst_46 : f32 to vector<8x1xf32>
    %140 = arith.divf %138, %139 : vector<8x1xf32>
    %141 = vector.broadcast %133 : vector<8x1xf32> to vector<8x32xf32>
    %142 = arith.subf %129, %141 : vector<8x32xf32>
    %cst_47 = arith.constant 9.99999974E-6 : f32
    %143 = vector.broadcast %cst_47 : f32 to vector<8x1xf32>
    %144 = arith.addf %140, %143 : vector<8x1xf32>
    %145 = math.rsqrt %144 : vector<8x1xf32>
    %146 = vector.broadcast %145 : vector<8x1xf32> to vector<8x32xf32>
    %147 = arith.mulf %142, %146 : vector<8x32xf32>
    %148 = vector.broadcast %7 : vector<1x32xf32> to vector<8x32xf32>
    %149 = arith.mulf %147, %148 : vector<8x32xf32>
    %150 = vector.broadcast %8 : vector<1x32xf32> to vector<8x32xf32>
    %151 = arith.addf %149, %150 : vector<8x32xf32>
    %152 = arith.truncf %151 : vector<8x32xf32> to vector<8x32xbf16>
    %c0_48 = arith.constant 0 : index
    %c0_49 = arith.constant 0 : index
    %153 = vector.load %arg10[%c0_48, %c0_49] : memref<32x32xbf16, #tpu.memory_space<vmem>>, vector<32x32xbf16>
    %cst_50 = arith.constant dense<0.000000e+00> : vector<8x32xf32>
    %154 = tpu.matmul %152, %153, %cst_50 {dimension_numbers = #tpu.dot_dimension_numbers<[1], [0], [0], [1], [0, 0, 1, 1], [], []>} : vector<8x32xbf16>, vector<32x32xbf16>, vector<8x32xf32> -> vector<8x32xf32>
    %155 = vector.broadcast %9 : vector<1x32xf32> to vector<8x32xf32>
    %156 = arith.addf %154, %155 : vector<8x32xf32>
    %cst_51 = arith.constant 0.353553385 : f32
    %157 = vector.broadcast %cst_51 : f32 to vector<8x32xf32>
    %158 = arith.mulf %156, %157 : vector<8x32xf32>
    %c0_52 = arith.constant 0 : index
    %c0_53 = arith.constant 0 : index
    %c0_54 = arith.constant 0 : index
    %159 = vector.load %arg5[%c0_52, %c0_53, %c0_54] : memref<1x1x8xf32, #tpu.memory_space<vmem>>, vector<1x1x8xf32>
    %160 = vector.shape_cast %159 : vector<1x1x8xf32> to vector<1x8xf32>
    %cst_55 = arith.constant 0.000000e+00 : f32
    %161 = vector.broadcast %cst_55 : f32 to vector<1x8xf32>
    %162 = arith.cmpf oeq, %160, %161 : vector<1x8xf32>
    %163 = vector.shape_cast %162 : vector<1x8xi1> to vector<1x8xi1>
    %164 = vector.broadcast %163 : vector<1x8xi1> to vector<8x8xi1>
    %c0_56 = arith.constant 0 : index
    %c0_57 = arith.constant 0 : index
    %165 = vector.load %arg25[%c0_56, %c0_57] : memref<8x32xbf16, #tpu.memory_space<vmem>>, vector<8x32xbf16>
    %c0_58 = arith.constant 0 : index
    %c0_59 = arith.constant 0 : index
    %166 = vector.load %arg26[%c0_58, %c0_59] : memref<8x32xbf16, #tpu.memory_space<vmem>>, vector<8x32xbf16>
    %167 = arith.truncf %158 : vector<8x32xf32> to vector<8x32xbf16>
    %168 = vector.extract_strided_slice %167 {offsets = [0, 0], sizes = [8, 8], strides = [1, 1]} : vector<8x32xbf16> to vector<8x8xbf16>
    %169 = vector.extract_strided_slice %165 {offsets = [0, 0], sizes = [8, 8], strides = [1, 1]} : vector<8x32xbf16> to vector<8x8xbf16>
    %cst_60 = arith.constant dense<0.000000e+00> : vector<8x8xf32>
    %170 = tpu.matmul %168, %169, %cst_60 {dimension_numbers = #tpu.dot_dimension_numbers<[1], [1], [0], [0], [0, 0, 1, 0], [], []>} : vector<8x8xbf16>, vector<8x8xbf16>, vector<8x8xf32> -> vector<8x8xf32>
    %cst_61 = arith.constant -1.000000e+20 : f32
    %171 = vector.broadcast %cst_61 : f32 to vector<8x8xf32>
    %172 = arith.select %164, %171, %170 : vector<8x8xi1>, vector<8x8xf32>
    %cst_62 = arith.constant dense<0xFF800000> : vector<8xf32>
    %173 = vector.multi_reduction <maximumf>, %172, %cst_62 [1] : vector<8x8xf32> to vector<8xf32>
    %174 = vector.shape_cast %173 : vector<8xf32> to vector<8x1xf32>
    %175 = vector.broadcast %174 : vector<8x1xf32> to vector<8x8xf32>
    %176 = arith.subf %172, %175 : vector<8x8xf32>
    %177 = math.exp %176 : vector<8x8xf32>
    %cst_63 = arith.constant dense<0.000000e+00> : vector<8xf32>
    %178 = vector.multi_reduction <add>, %177, %cst_63 [1] : vector<8x8xf32> to vector<8xf32>
    %179 = vector.shape_cast %178 : vector<8xf32> to vector<8x1xf32>
    %180 = tpu.reciprocal %179 {approx = true} : vector<8x1xf32> -> vector<8x1xf32>
    %181 = vector.broadcast %180 : vector<8x1xf32> to vector<8x8xf32>
    %182 = arith.mulf %177, %181 : vector<8x8xf32>
    %183 = arith.truncf %182 : vector<8x8xf32> to vector<8x8xbf16>
    %184 = vector.extract_strided_slice %166 {offsets = [0, 0], sizes = [8, 8], strides = [1, 1]} : vector<8x32xbf16> to vector<8x8xbf16>
    %cst_64 = arith.constant dense<0.000000e+00> : vector<8x8xf32>
    %185 = tpu.matmul %183, %184, %cst_64 {dimension_numbers = #tpu.dot_dimension_numbers<[1], [0], [0], [1], [0, 0, 1, 1], [], []>} : vector<8x8xbf16>, vector<8x8xbf16>, vector<8x8xf32> -> vector<8x8xf32>
    %186 = arith.truncf %185 : vector<8x8xf32> to vector<8x8xbf16>
    %187 = vector.extract_strided_slice %167 {offsets = [0, 8], sizes = [8, 8], strides = [1, 1]} : vector<8x32xbf16> to vector<8x8xbf16>
    %188 = vector.extract_strided_slice %165 {offsets = [0, 8], sizes = [8, 8], strides = [1, 1]} : vector<8x32xbf16> to vector<8x8xbf16>
    %cst_65 = arith.constant dense<0.000000e+00> : vector<8x8xf32>
    %189 = tpu.matmul %187, %188, %cst_65 {dimension_numbers = #tpu.dot_dimension_numbers<[1], [1], [0], [0], [0, 0, 1, 0], [], []>} : vector<8x8xbf16>, vector<8x8xbf16>, vector<8x8xf32> -> vector<8x8xf32>
    %cst_66 = arith.constant -1.000000e+20 : f32
    %190 = vector.broadcast %cst_66 : f32 to vector<8x8xf32>
    %191 = arith.select %164, %190, %189 : vector<8x8xi1>, vector<8x8xf32>
    %cst_67 = arith.constant dense<0xFF800000> : vector<8xf32>
    %192 = vector.multi_reduction <maximumf>, %191, %cst_67 [1] : vector<8x8xf32> to vector<8xf32>
    %193 = vector.shape_cast %192 : vector<8xf32> to vector<8x1xf32>
    %194 = vector.broadcast %193 : vector<8x1xf32> to vector<8x8xf32>
    %195 = arith.subf %191, %194 : vector<8x8xf32>
    %196 = math.exp %195 : vector<8x8xf32>
    %cst_68 = arith.constant dense<0.000000e+00> : vector<8xf32>
    %197 = vector.multi_reduction <add>, %196, %cst_68 [1] : vector<8x8xf32> to vector<8xf32>
    %198 = vector.shape_cast %197 : vector<8xf32> to vector<8x1xf32>
    %199 = tpu.reciprocal %198 {approx = true} : vector<8x1xf32> -> vector<8x1xf32>
    %200 = vector.broadcast %199 : vector<8x1xf32> to vector<8x8xf32>
    %201 = arith.mulf %196, %200 : vector<8x8xf32>
    %202 = arith.truncf %201 : vector<8x8xf32> to vector<8x8xbf16>
    %203 = vector.extract_strided_slice %166 {offsets = [0, 8], sizes = [8, 8], strides = [1, 1]} : vector<8x32xbf16> to vector<8x8xbf16>
    %cst_69 = arith.constant dense<0.000000e+00> : vector<8x8xf32>
    %204 = tpu.matmul %202, %203, %cst_69 {dimension_numbers = #tpu.dot_dimension_numbers<[1], [0], [0], [1], [0, 0, 1, 1], [], []>} : vector<8x8xbf16>, vector<8x8xbf16>, vector<8x8xf32> -> vector<8x8xf32>
    %205 = arith.truncf %204 : vector<8x8xf32> to vector<8x8xbf16>
    %206 = vector.extract_strided_slice %167 {offsets = [0, 16], sizes = [8, 8], strides = [1, 1]} : vector<8x32xbf16> to vector<8x8xbf16>
    %207 = vector.extract_strided_slice %165 {offsets = [0, 16], sizes = [8, 8], strides = [1, 1]} : vector<8x32xbf16> to vector<8x8xbf16>
    %cst_70 = arith.constant dense<0.000000e+00> : vector<8x8xf32>
    %208 = tpu.matmul %206, %207, %cst_70 {dimension_numbers = #tpu.dot_dimension_numbers<[1], [1], [0], [0], [0, 0, 1, 0], [], []>} : vector<8x8xbf16>, vector<8x8xbf16>, vector<8x8xf32> -> vector<8x8xf32>
    %cst_71 = arith.constant -1.000000e+20 : f32
    %209 = vector.broadcast %cst_71 : f32 to vector<8x8xf32>
    %210 = arith.select %164, %209, %208 : vector<8x8xi1>, vector<8x8xf32>
    %cst_72 = arith.constant dense<0xFF800000> : vector<8xf32>
    %211 = vector.multi_reduction <maximumf>, %210, %cst_72 [1] : vector<8x8xf32> to vector<8xf32>
    %212 = vector.shape_cast %211 : vector<8xf32> to vector<8x1xf32>
    %213 = vector.broadcast %212 : vector<8x1xf32> to vector<8x8xf32>
    %214 = arith.subf %210, %213 : vector<8x8xf32>
    %215 = math.exp %214 : vector<8x8xf32>
    %cst_73 = arith.constant dense<0.000000e+00> : vector<8xf32>
    %216 = vector.multi_reduction <add>, %215, %cst_73 [1] : vector<8x8xf32> to vector<8xf32>
    %217 = vector.shape_cast %216 : vector<8xf32> to vector<8x1xf32>
    %218 = tpu.reciprocal %217 {approx = true} : vector<8x1xf32> -> vector<8x1xf32>
    %219 = vector.broadcast %218 : vector<8x1xf32> to vector<8x8xf32>
    %220 = arith.mulf %215, %219 : vector<8x8xf32>
    %221 = arith.truncf %220 : vector<8x8xf32> to vector<8x8xbf16>
    %222 = vector.extract_strided_slice %166 {offsets = [0, 16], sizes = [8, 8], strides = [1, 1]} : vector<8x32xbf16> to vector<8x8xbf16>
    %cst_74 = arith.constant dense<0.000000e+00> : vector<8x8xf32>
    %223 = tpu.matmul %221, %222, %cst_74 {dimension_numbers = #tpu.dot_dimension_numbers<[1], [0], [0], [1], [0, 0, 1, 1], [], []>} : vector<8x8xbf16>, vector<8x8xbf16>, vector<8x8xf32> -> vector<8x8xf32>
    %224 = arith.truncf %223 : vector<8x8xf32> to vector<8x8xbf16>
    %225 = vector.extract_strided_slice %167 {offsets = [0, 24], sizes = [8, 8], strides = [1, 1]} : vector<8x32xbf16> to vector<8x8xbf16>
    %226 = vector.extract_strided_slice %165 {offsets = [0, 24], sizes = [8, 8], strides = [1, 1]} : vector<8x32xbf16> to vector<8x8xbf16>
    %cst_75 = arith.constant dense<0.000000e+00> : vector<8x8xf32>
    %227 = tpu.matmul %225, %226, %cst_75 {dimension_numbers = #tpu.dot_dimension_numbers<[1], [1], [0], [0], [0, 0, 1, 0], [], []>} : vector<8x8xbf16>, vector<8x8xbf16>, vector<8x8xf32> -> vector<8x8xf32>
    %cst_76 = arith.constant -1.000000e+20 : f32
    %228 = vector.broadcast %cst_76 : f32 to vector<8x8xf32>
    %229 = arith.select %164, %228, %227 : vector<8x8xi1>, vector<8x8xf32>
    %cst_77 = arith.constant dense<0xFF800000> : vector<8xf32>
    %230 = vector.multi_reduction <maximumf>, %229, %cst_77 [1] : vector<8x8xf32> to vector<8xf32>
    %231 = vector.shape_cast %230 : vector<8xf32> to vector<8x1xf32>
    %232 = vector.broadcast %231 : vector<8x1xf32> to vector<8x8xf32>
    %233 = arith.subf %229, %232 : vector<8x8xf32>
    %234 = math.exp %233 : vector<8x8xf32>
    %cst_78 = arith.constant dense<0.000000e+00> : vector<8xf32>
    %235 = vector.multi_reduction <add>, %234, %cst_78 [1] : vector<8x8xf32> to vector<8xf32>
    %236 = vector.shape_cast %235 : vector<8xf32> to vector<8x1xf32>
    %237 = tpu.reciprocal %236 {approx = true} : vector<8x1xf32> -> vector<8x1xf32>
    %238 = vector.broadcast %237 : vector<8x1xf32> to vector<8x8xf32>
    %239 = arith.mulf %234, %238 : vector<8x8xf32>
    %240 = arith.truncf %239 : vector<8x8xf32> to vector<8x8xbf16>
    %241 = vector.extract_strided_slice %166 {offsets = [0, 24], sizes = [8, 8], strides = [1, 1]} : vector<8x32xbf16> to vector<8x8xbf16>
    %cst_79 = arith.constant dense<0.000000e+00> : vector<8x8xf32>
    %242 = tpu.matmul %240, %241, %cst_79 {dimension_numbers = #tpu.dot_dimension_numbers<[1], [0], [0], [1], [0, 0, 1, 1], [], []>} : vector<8x8xbf16>, vector<8x8xbf16>, vector<8x8xf32> -> vector<8x8xf32>
    %243 = arith.truncf %242 : vector<8x8xf32> to vector<8x8xbf16>
    %244 = tpu.concatenate %186, %205, %224, %243 in 1 : vector<8x8xbf16>, vector<8x8xbf16>, vector<8x8xbf16>, vector<8x8xbf16> -> vector<8x32xbf16>
    %c0_80 = arith.constant 0 : index
    %c0_81 = arith.constant 0 : index
    %245 = vector.load %arg13[%c0_80, %c0_81] : memref<32x32xbf16, #tpu.memory_space<vmem>>, vector<32x32xbf16>
    %cst_82 = arith.constant dense<0.000000e+00> : vector<8x32xf32>
    %246 = tpu.matmul %244, %245, %cst_82 {dimension_numbers = #tpu.dot_dimension_numbers<[1], [0], [0], [1], [0, 0, 1, 1], [], []>} : vector<8x32xbf16>, vector<32x32xbf16>, vector<8x32xf32> -> vector<8x32xf32>
    %247 = vector.broadcast %12 : vector<1x32xf32> to vector<8x32xf32>
    %248 = arith.addf %246, %247 : vector<8x32xf32>
    %249 = arith.addf %151, %248 : vector<8x32xf32>
    %cst_83 = arith.constant dense<0.000000e+00> : vector<8xf32>
    %250 = vector.multi_reduction <add>, %249, %cst_83 [1] : vector<8x32xf32> to vector<8xf32>
    %251 = vector.shape_cast %250 : vector<8xf32> to vector<8x1xf32>
    %cst_84 = arith.constant 3.200000e+01 : f32
    %252 = vector.broadcast %cst_84 : f32 to vector<8x1xf32>
    %253 = arith.divf %251, %252 : vector<8x1xf32>
    %254 = vector.broadcast %253 : vector<8x1xf32> to vector<8x32xf32>
    %255 = arith.subf %249, %254 : vector<8x32xf32>
    %256 = arith.mulf %255, %255 : vector<8x32xf32>
    %cst_85 = arith.constant dense<0.000000e+00> : vector<8xf32>
    %257 = vector.multi_reduction <add>, %256, %cst_85 [1] : vector<8x32xf32> to vector<8xf32>
    %258 = vector.shape_cast %257 : vector<8xf32> to vector<8x1xf32>
    %cst_86 = arith.constant 3.200000e+01 : f32
    %259 = vector.broadcast %cst_86 : f32 to vector<8x1xf32>
    %260 = arith.divf %258, %259 : vector<8x1xf32>
    %261 = vector.broadcast %253 : vector<8x1xf32> to vector<8x32xf32>
    %262 = arith.subf %249, %261 : vector<8x32xf32>
    %cst_87 = arith.constant 9.99999974E-6 : f32
    %263 = vector.broadcast %cst_87 : f32 to vector<8x1xf32>
    %264 = arith.addf %260, %263 : vector<8x1xf32>
    %265 = math.rsqrt %264 : vector<8x1xf32>
    %266 = vector.broadcast %265 : vector<8x1xf32> to vector<8x32xf32>
    %267 = arith.mulf %262, %266 : vector<8x32xf32>
    %268 = vector.broadcast %13 : vector<1x32xf32> to vector<8x32xf32>
    %269 = arith.mulf %267, %268 : vector<8x32xf32>
    %270 = vector.broadcast %14 : vector<1x32xf32> to vector<8x32xf32>
    %271 = arith.addf %269, %270 : vector<8x32xf32>
    %272 = arith.truncf %271 : vector<8x32xf32> to vector<8x32xbf16>
    %c0_88 = arith.constant 0 : index
    %c0_89 = arith.constant 0 : index
    %273 = vector.load %arg14[%c0_88, %c0_89] : memref<32x64xbf16, #tpu.memory_space<vmem>>, vector<32x64xbf16>
    %cst_90 = arith.constant dense<0.000000e+00> : vector<8x64xf32>
    %274 = tpu.matmul %272, %273, %cst_90 {dimension_numbers = #tpu.dot_dimension_numbers<[1], [0], [0], [1], [0, 0, 1, 1], [], []>} : vector<8x32xbf16>, vector<32x64xbf16>, vector<8x64xf32> -> vector<8x64xf32>
    %c0_91 = arith.constant 0 : index
    %c0_92 = arith.constant 0 : index
    %275 = vector.load %arg17[%c0_91, %c0_92] : memref<1x64xf32, #tpu.memory_space<vmem>>, vector<1x64xf32>
    %276 = vector.broadcast %275 : vector<1x64xf32> to vector<8x64xf32>
    %277 = arith.addf %274, %276 : vector<8x64xf32>
    %cst_93 = arith.constant 0.000000e+00 : f32
    %278 = vector.broadcast %cst_93 : f32 to vector<8x64xf32>
    %279 = arith.maximumf %277, %278 : vector<8x64xf32>
    %280 = arith.truncf %279 : vector<8x64xf32> to vector<8x64xbf16>
    %c0_94 = arith.constant 0 : index
    %c0_95 = arith.constant 0 : index
    %281 = vector.load %arg15[%c0_94, %c0_95] : memref<64x32xbf16, #tpu.memory_space<vmem>>, vector<64x32xbf16>
    %cst_96 = arith.constant dense<0.000000e+00> : vector<8x32xf32>
    %282 = tpu.matmul %280, %281, %cst_96 {dimension_numbers = #tpu.dot_dimension_numbers<[1], [0], [0], [1], [0, 0, 1, 1], [], []>} : vector<8x64xbf16>, vector<64x32xbf16>, vector<8x32xf32> -> vector<8x32xf32>
    %283 = vector.broadcast %15 : vector<1x32xf32> to vector<8x32xf32>
    %284 = arith.addf %282, %283 : vector<8x32xf32>
    %285 = arith.addf %271, %284 : vector<8x32xf32>
    %cst_97 = arith.constant dense<0.000000e+00> : vector<8xf32>
    %286 = vector.multi_reduction <add>, %285, %cst_97 [1] : vector<8x32xf32> to vector<8xf32>
    %287 = vector.shape_cast %286 : vector<8xf32> to vector<8x1xf32>
    %cst_98 = arith.constant 3.200000e+01 : f32
    %288 = vector.broadcast %cst_98 : f32 to vector<8x1xf32>
    %289 = arith.divf %287, %288 : vector<8x1xf32>
    %290 = vector.broadcast %289 : vector<8x1xf32> to vector<8x32xf32>
    %291 = arith.subf %285, %290 : vector<8x32xf32>
    %292 = arith.mulf %291, %291 : vector<8x32xf32>
    %cst_99 = arith.constant dense<0.000000e+00> : vector<8xf32>
    %293 = vector.multi_reduction <add>, %292, %cst_99 [1] : vector<8x32xf32> to vector<8xf32>
    %294 = vector.shape_cast %293 : vector<8xf32> to vector<8x1xf32>
    %cst_100 = arith.constant 3.200000e+01 : f32
    %295 = vector.broadcast %cst_100 : f32 to vector<8x1xf32>
    %296 = arith.divf %294, %295 : vector<8x1xf32>
    %297 = vector.broadcast %289 : vector<8x1xf32> to vector<8x32xf32>
    %298 = arith.subf %285, %297 : vector<8x32xf32>
    %cst_101 = arith.constant 9.99999974E-6 : f32
    %299 = vector.broadcast %cst_101 : f32 to vector<8x1xf32>
    %300 = arith.addf %296, %299 : vector<8x1xf32>
    %301 = math.rsqrt %300 : vector<8x1xf32>
    %302 = vector.broadcast %301 : vector<8x1xf32> to vector<8x32xf32>
    %303 = arith.mulf %298, %302 : vector<8x32xf32>
    %304 = vector.broadcast %16 : vector<1x32xf32> to vector<8x32xf32>
    %305 = arith.mulf %303, %304 : vector<8x32xf32>
    %306 = vector.broadcast %17 : vector<1x32xf32> to vector<8x32xf32>
    %307 = arith.addf %305, %306 : vector<8x32xf32>
    %c0_102 = arith.constant 0 : index
    %c0_103 = arith.constant 0 : index
    %c0_104 = arith.constant 0 : index
    %308 = vector.load %arg18[%c0_102, %c0_103, %c0_104] : memref<1x8x32xf32, #tpu.memory_space<vmem>>, vector<1x8x32xf32>
    %309 = vector.shape_cast %308 : vector<1x8x32xf32> to vector<8x32xf32>
    %310 = vector.shape_cast %307 : vector<8x32xf32> to vector<1x8x32xf32>
    tpu.vector_store %arg18[%c0_102, %c0_103, %c0_104], %310 {strides = array<i32>} : memref<1x8x32xf32, #tpu.memory_space<vmem>>, vector<1x8x32xf32>,
    return
  }
  func.func @transform_0(%arg0: i32, %arg1: i32) -> (i32, i32, i32) {
    %c0_i32 = arith.constant 0 : i32
    %c0_i32_0 = arith.constant 0 : i32
    return %arg0, %arg1, %c0_i32 : i32, i32, i32
  }
  func.func @transform_1(%arg0: i32, %arg1: i32) -> (i32, i32, i32) {
    %c0_i32 = arith.constant 0 : i32
    %c0_i32_0 = arith.constant 0 : i32
    %c0_i32_1 = arith.constant 0 : i32
    return %arg0, %c0_i32, %c0_i32_0 : i32, i32, i32
  }
  func.func @transform_2(%arg0: i32, %arg1: i32) -> (i32, i32, i32) {
    %c0_i32 = arith.constant 0 : i32
    %c0_i32_0 = arith.constant 0 : i32
    %c0_i32_1 = arith.constant 0 : i32
    return %arg0, %c0_i32, %c0_i32_0 : i32, i32, i32
  }
  func.func @transform_3(%arg0: i32, %arg1: i32) -> (i32, i32, i32) {
    %c0_i32 = arith.constant 0 : i32
    %c0_i32_0 = arith.constant 0 : i32
    %c0_i32_1 = arith.constant 0 : i32
    return %arg0, %c0_i32, %c0_i32_0 : i32, i32, i32
  }
  func.func @transform_4(%arg0: i32, %arg1: i32) -> (i32, i32) {
    %c0_i32 = arith.constant 0 : i32
    %c0_i32_0 = arith.constant 0 : i32
    %c0_i32_1 = arith.constant 0 : i32
    return %c0_i32, %c0_i32_0 : i32, i32
  }
  func.func @transform_5(%arg0: i32, %arg1: i32) -> (i32, i32) {
    %c0_i32 = arith.constant 0 : i32
    %c0_i32_0 = arith.constant 0 : i32
    %c0_i32_1 = arith.constant 0 : i32
    return %c0_i32, %c0_i32_0 : i32, i32
  }
  func.func @transform_6(%arg0: i32, %arg1: i32) -> (i32, i32) {
    %c0_i32 = arith.constant 0 : i32
    %c0_i32_0 = arith.constant 0 : i32
    %c0_i32_1 = arith.constant 0 : i32
    return %c0_i32, %c0_i32_0 : i32, i32
  }
  func.func @transform_7(%arg0: i32, %arg1: i32) -> (i32, i32) {
    %c0_i32 = arith.constant 0 : i32
    %c0_i32_0 = arith.constant 0 : i32
    %c0_i32_1 = arith.constant 0 : i32
    return %c0_i32, %c0_i32_0 : i32, i32
  }
  func.func @transform_8(%arg0: i32, %arg1: i32) -> (i32, i32) {
    %c0_i32 = arith.constant 0 : i32
    %c0_i32_0 = arith.constant 0 : i32
    %c0_i32_1 = arith.constant 0 : i32
    return %c0_i32, %c0_i32_0 : i32, i32
  }
  func.func @transform_9(%arg0: i32, %arg1: i32) -> (i32, i32) {
    %c0_i32 = arith.constant 0 : i32
    %c0_i32_0 = arith.constant 0 : i32
    %c0_i32_1 = arith.constant 0 : i32
    return %c0_i32, %c0_i32_0 : i32, i32
  }
  func.func @transform_10(%arg0: i32, %arg1: i32) -> (i32, i32) {
    %c0_i32 = arith.constant 0 : i32
    %c0_i32_0 = arith.constant 0 : i32
    %c0_i32_1 = arith.constant 0 : i32
    return %c0_i32, %c0_i32_0 : i32, i32
  }
  func.func @transform_11(%arg0: i32, %arg1: i32) -> (i32, i32) {
    %c0_i32 = arith.constant 0 : i32
    %c0_i32_0 = arith.constant 0 : i32
    %c0_i32_1 = arith.constant 0 : i32
    return %c0_i32, %c0_i32_0 : i32, i32
  }
  func.func @transform_12(%arg0: i32, %arg1: i32) -> (i32, i32) {
    %c0_i32 = arith.constant 0 : i32
    %c0_i32_0 = arith.constant 0 : i32
    %c0_i32_1 = arith.constant 0 : i32
    return %c0_i32, %c0_i32_0 : i32, i32
  }
  func.func @transform_13(%arg0: i32, %arg1: i32) -> (i32, i32) {
    %c0_i32 = arith.constant 0 : i32
    %c0_i32_0 = arith.constant 0 : i32
    %c0_i32_1 = arith.constant 0 : i32
    return %c0_i32, %c0_i32_0 : i32, i32
  }
  func.func @transform_14(%arg0: i32, %arg1: i32) -> (i32, i32) {
    %c0_i32 = arith.constant 0 : i32
    %c0_i32_0 = arith.constant 0 : i32
    %c0_i32_1 = arith.constant 0 : i32
    return %c0_i32, %c0_i32_0 : i32, i32
  }
  func.func @transform_15(%arg0: i32, %arg1: i32) -> (i32, i32) {
    %c0_i32 = arith.constant 0 : i32
    %c0_i32_0 = arith.constant 0 : i32
    %c0_i32_1 = arith.constant 0 : i32
    return %c0_i32, %c0_i32_0 : i32, i32
  }
  func.func @transform_16(%arg0: i32, %arg1: i32) -> (i32, i32, i32) {
    %c0_i32 = arith.constant 0 : i32
    %c0_i32_0 = arith.constant 0 : i32
    return %arg0, %arg1, %c0_i32 : i32, i32, i32
  }
  func.func @transform_17(%arg0: i32, %arg1: i32) -> (i32, i32, i32) {
    %c0_i32 = arith.constant 0 : i32
    %c0_i32_0 = arith.constant 0 : i32
    return %arg0, %arg1, %c0_i32 : i32, i32, i32
  }
  func.func @transform_18(%arg0: i32, %arg1: i32) -> (i32, i32, i32) {
    %c0_i32 = arith.constant 0 : i32
    %c0_i32_0 = arith.constant 0 : i32
    return %arg0, %arg1, %c0_i32 : i32, i32, i32
  }
  func.func @transform_19(%arg0: i32, %arg1: i32) -> (i32, i32, i32) {
    %c0_i32 = arith.constant 0 : i32
    %c0_i32_0 = arith.constant 0 : i32
    %c0_i32_1 = arith.constant 0 : i32
    return %arg0, %c0_i32, %c0_i32_0 : i32, i32, i32
  }
  func.func @transform_20(%arg0: i32, %arg1: i32) -> (i32, i32, i32) {
    %c0_i32 = arith.constant 0 : i32
    %c0_i32_0 = arith.constant 0 : i32
    %c0_i32_1 = arith.constant 0 : i32
    return %arg0, %c0_i32, %c0_i32_0 : i32, i32, i32
  }
}

</mosaic_0001>

<bundles_post_ra>
// kernel: tpu_custom_call.1
= control target key start
LH: loop header
LB: loop body
LE: loop exit
PB: predicated region body
PF: predicated region fallthrough
CT: control target
= control target key end

     0   :  { %s4991_s0 = inlined_call_operand.vmem [shape: f32[2,8,32], index: 0, kind: input, shape index: {}]   ;;  %s4992_s1 = inlined_call_operand.hbm [shape: bf16[2,8,32], index: 1, kind: input, shape index: {}]   ;;  %s4993_s2 = inlined_call_operand.hbm [shape: bf16[2,8,32], index: 2, kind: input, shape index: {}]   ;;  %s4994_s3 = inlined_call_operand.hbm [shape: f32[2,1,8], index: 3, kind: input, shape index: {}]   ;;  %s4995_s4 = inlined_call_operand.vmem [shape: bf16[32,32], index: 4, kind: input, shape index: {}]   ;;  %s4996_s5 = inlined_call_operand.vmem [shape: bf16[32,32], index: 5, kind: input, shape index: {}]   ;;  %s4997_s6 = inlined_call_operand.vmem [shape: bf16[32,32], index: 6, kind: input, shape index: {}]   ;;  %s4998_s7 = inlined_call_operand.hbm [shape: bf16[32,32], index: 7, kind: input, shape index: {}]   ;;  %s4999_s8 = inlined_call_operand.hbm [shape: bf16[32,32], index: 8, kind: input, shape index: {}]   ;;  %s5000_s9 = inlined_call_operand.vmem [shape: bf16[32,32], index: 9, kind: input, shape index: {}]   ;;  %s5001_s10 = inlined_call_operand.hbm [shape: bf16[32,32], index: 10, kind: input, shape index: {}]   ;;  %s5002_s11 = inlined_call_operand.hbm [shape: bf16[32,32], index: 11, kind: input, shape index: {}]   ;;  %s5003_s12 = inlined_call_operand.hbm [shape: bf16[32,64], index: 12, kind: input, shape index: {}]   ;;  %s5004_s13 = inlined_call_operand.vmem [shape: bf16[64,32], index: 13, kind: input, shape index: {}]   ;;  %s5005_s14 = inlined_call_operand.vmem [shape: f32[15,32], index: 14, kind: input, shape index: {}]   ;;  %s5006_s15 = inlined_call_operand.vmem [shape: f32[1,64], index: 15, kind: input, shape index: {}]   ;;  %s5007_s16 = inlined_call_operand.hbm [shape: f32[2,8,32], index: 16, kind: output, shape index: {0}]   ;;  %s5008_s17 = inlined_call_operand.hbm [shape: bf16[2,8,32], index: 17, kind: output, shape index: {1}]   ;;  %s5009_s18 = inlined_call_operand.hbm [shape: bf16[2,8,32], index: 18, kind: output, shape index: {2}]   ;;  %s5010_s19 = inlined_call_operand.hbm [shape: bf16[2,8,32], index: 19, kind: output, shape index: {3}]   ;;  %s5011_s20 = inlined_call_operand.hbm [shape: bf16[2,8,32], index: 20, kind: output, shape index: {4}]  }
   0x1   :  { %5055 = sst [smem:[#allocation42_spill]] %s4991_s0 }
   0x2   :  { %5056 = sst [smem:[#allocation43_spill]] %s4992_s1 }
   0x3   :  { %5057 = sst [smem:[#allocation44_spill]] %s4993_s2 }
   0x4   :  { %5058 = sst [smem:[#allocation45_spill]] %s4994_s3 }
   0x5   :  { %5059 = sst [smem:[#allocation46_spill]] %s4995_s4 }
   0x6   :  { %5060 = sst [smem:[#allocation47_spill]] %s4996_s5 }
   0x7   :  { %5061 = sst [smem:[#allocation48_spill]] %s4997_s6 }
   0x8   :  { %5062 = sst [smem:[#allocation49_spill]] %s4998_s7 }
   0x9   :  { %5063 = sst [smem:[#allocation50_spill]] %s4999_s8 }
   0xa   :  { %5064 = sst [smem:[#allocation51_spill]] %s5001_s10 }
   0xb   :  { %5065 = sst [smem:[#allocation52_spill]] %s5002_s11 }
   0xc   :  { %5066 = sst [smem:[#allocation53_spill]] %s5004_s13 }
   0xd   :  { %5067 = sst [smem:[#allocation54_spill]] %s5005_s14 }
   0xe   :  { %5068 = sst [smem:[#allocation55_spill]] %s5006_s15 }
   0xf   :  { %5069 = sst [smem:[#allocation56_spill]] %s5007_s16 }
  0x10   :  { %5070 = sst [smem:[#allocation57_spill]] %s5008_s17 }
  0x11   :  { %5071 = sst [smem:[#allocation58_spill]] %s5009_s18 }
  0x12   :  { %5072 = sst [smem:[#allocation59_spill]] %s5010_s19 }
  0x13   :  { %5073 = sst [smem:[#allocation60_spill]] %s5011_s20 }
  0x14   :  { %26 = vsyncpa [#allocation7], 0 }
  0x15   :  { %28 = vsyncpa [#allocation7 + $0x1], 0 }
  0x16   :  { %29 = vsyncpa [#allocation10], 0 }
  0x17   :  { %31 = vsyncpa [#allocation10 + $0x1], 0 }
  0x18   :  { %32 = vsyncpa [#allocation13], 0 }
  0x19   :  { %33 = vsyncpa [#allocation16], 0 }
  0x1a   :  { %34 = vsyncpa [#allocation19], 0 }
  0x1b   :  { %35 = vsyncpa [#allocation8], 0 }
  0x1c   :  { %37 = vsyncpa [#allocation8 + $0x1], 0 }
  0x1d   :  { %38 = vsyncpa [#allocation22], 0 }
  0x1e   :  { %40 = vsyncpa [#allocation22 + $0x1], 0 }
  0x1f   :  { %41 = vsyncpa [#allocation25], 0 }
  0x20   :  { %43 = vsyncpa [#allocation25 + $0x1], 0  ;;  %s4113_s1 = smov 0   ;;  %s4115_s22 = smov 0  }
  0x21   :  { %s4117_s23 = smov 0   ;;  %s4119_s24 = smov 0  }
  0x22   :  { %s4121_s2 = smov 0   ;;  %s4123_s25 = smov 0  }
  0x23 LB: > { %5074 = sst [smem:[#allocation35_spill]] %s3962_s1  ;;  %s4144_s3 = sadd.s32 4294967295, %s3982_s25   ;;  %s3982_s25 = sphi %s4123_s25, %s49_s25   ;;  %s3978_s2 = sphi %s4121_s2, %s5145_s2   ;;  %s3974_s24 = sphi %s4119_s24, %s5144_s24   ;;  %s3970_s23 = sphi %s4117_s23, %s5140_s23   ;;  %s3966_s22 = sphi %s4115_s22, %s5143_s22   ;;  %s3962_s1 = sphi %s4113_s1, %s5142_s1  }
  0x24   : > { %5075 = sst [smem:[#allocation36_spill]] %s3970_s23  ;;  %p2981_p0 = scmp.ge.s32.totalorder %s3982_s25, 1 }
  0x25   : > { %5076 = sst [smem:[#allocation37_spill]] %s3982_s25  ;;  %p5034_p1 = scmp.eq.s32.totalorder %s4144_s3, 0 }
  0x26   : > { %p560_p2 = scmp.lt.s32.totalorder %s3982_s25, 3  ;;  %s3984_s27 = smov [#allocation12]  }
  0x27   : > { %s581_s28 = sshll.u32 %s3984_s27, 4  ;;  %s3985_s29 = smov [#allocation15]   ;;  %s4153_s28 = int_to_ptr.vmem [resolvable:$true] %s581_s28 }
  0x28   : > { %p4149_p3 = pnand %p2981_p0, %p560_p2  ;;  %s610_s30 = sshll.u32 %s3985_s29, 4  ;;  %s4164_s30 = int_to_ptr.vmem [resolvable:$true] %s610_s30 }
  0x29   : > { %s5079_s7 = sld [smem:[#allocation49_spill]] }
  0x2a   : > { %s5077_s26 = scalar_select %p4149_p3, 1, 0 }
  0x2b   : > { %p3352_p4 = pneg %p4149_p3 }
  0x2d   : > { %p4160_p6 = pnand %p3352_p4, %p5034_p1 }
  0x2f   : > { %s5078_s4 = scalar_select %p4160_p6, 1, 0 }
  0x30   : > { %s3534_s16 = scalar_lea.hbm %s5079_s7, 256  ;;  %p4174_p8 = pneg %p4160_p6 }
  0x31   : > { %p3535_p7 = scmp.ne.s32.totalorder %s5079_s7, %s3534_s16  ;;  %p3541_p11 = scmp.lt.u32.totalorder %s3534_s16, %s5079_s7 }
  0x32   : > { %s5080_s18 = scalar_select %p4174_p8, 1, 0 }
  0x33   : > { %p3537_p9 = pnand %p4174_p8, %p3535_p7 }
  0x35   : > { %p3538_p10 = pneg %p3537_p9 }
  0x37   : > { %p3543_p12 = pnand %p3541_p11, %p3538_p10 }
  0x39   : > { %3546 = shalt.err (!%p3543_p12)
}
  0x3a   : > { %s3547_s20 = scalar_lea.vmem %s4153_s28, 256  ;;  %p3555_p4 = scmp.lt.s32.totalorder %s4153_s28, %s4153_s28 }
  0x3b   : > { %p3548_p13 = scmp.ne.s32.totalorder %s4153_s28, %s3547_s20  ;;  %p3556_p5 = scmp.lt.s32.totalorder %s3547_s20, %s3547_s20 }
  0x3d   : > { %p3550_p0 = pnand %p3548_p13, %p4174_p8  ;;  %p3557_p7 = por %p3556_p5, %p3555_p4 }
  0x3f   : > { %p3551_p2 = pneg %p3550_p0 }
  0x41   : > { %p3558_p9 = pnand %p3557_p7, %p3551_p2 }
  0x43   : > { %3561 = shalt.err (!%p3558_p9)
}
  0x44   : > { %s5023_s0 = smov 64   ;;  %s5026_s16 = smov 4  }
  0x45   : > { %3355 = dma.hbm_to_vmem [thread:$0]  (!%p4160_p6), %s5079_s7, 256, %s4153_s28, [#allocation13], %s5023_s0, %s5023_s0, %s5026_s16  }
  0x46   : > { %s5081_s10 = sld [smem:[#allocation51_spill]] }
  0x4c   : > { %s3562_s20 = scalar_lea.hbm %s5081_s10, 256 }
  0x4d   : > { %p3563_p5 = scmp.ne.s32.totalorder %s5081_s10, %s3562_s20  ;;  %p3569_p12 = scmp.lt.u32.totalorder %s3562_s20, %s5081_s10 }
  0x4f   : > { %p3565_p10 = pnand %p3563_p5, %p4174_p8 }
  0x51   : > { %p3566_p11 = pneg %p3565_p10 }
  0x53   : > { %p3571_p13 = pnand %p3569_p12, %p3566_p11 }
  0x55   : > { %3574 = shalt.err (!%p3571_p13)
}
  0x56   : > { %s3575_s28 = scalar_lea.vmem %s4164_s30, 256  ;;  %p3583_p7 = scmp.lt.s32.totalorder %s4164_s30, %s4164_s30 }
  0x57   : > { %p3576_p0 = scmp.ne.s32.totalorder %s4164_s30, %s3575_s28  ;;  %p3584_p9 = scmp.lt.s32.totalorder %s3575_s28, %s3575_s28 }
  0x59   : > { %p3578_p2 = pnand %p3576_p0, %p4174_p8  ;;  %p3585_p5 = por %p3584_p9, %p3583_p7 }
  0x5b   : > { %p3579_p4 = pneg %p3578_p2 }
  0x5d   : > { %p3586_p10 = pnand %p3585_p5, %p3579_p4 }
  0x5f   : > { %3589 = shalt.err (!%p3586_p10)
}
  0x60   : > { %3361 = dma.hbm_to_vmem [thread:$0]  (!%p4160_p6), %s5081_s10, 256, %s4164_s30, [#allocation16], %s5023_s0, %s5023_s0, %s5026_s16  }
  0x61   : > { %s5025_s15 = sadd.s32 4294967294, %s3982_s25   ;;  %s61_s17 = sadd.s32 1, %s3978_s2 }
  0x62   : > { %p63_p11 = scmp.ge.s32.totalorder %s61_s17, 2  ;;  %s96_s19 = sadd.s32 1, %s3970_s23 }
  0x63   : > { %p103_p12 = scmp.ne.s32.totalorder %s3970_s23, %s3966_s22  ;;  %p104_p13 = scmp.eq.s32.totalorder %s3982_s25, 0 }
  0x64   : > { %s5147_s17 = smov (%p63_p11, %s61_s17), 0  ;;  %p109_p2 = scmp.ne.s32.totalorder %s3966_s22, %s3962_s1 }
  0x65   : > { %5082 = sst [smem:[#allocation38_spill]] %s5147_s17  ;;  %p4232_p0 = por %p104_p13, %p103_p12 }
  0x66   : > { %s93_s30 = ssub.s32 %s3978_s2, %s5147_s17  ;;  %p439_p4 = scmp.eq.s32.totalorder %s4144_s3, 1 }
  0x67   : > { %p94_p7 = scmp.eq.s32.totalorder %s93_s30, 0  ;;  %p4243_p9 = por %p5034_p1, %p109_p2 }
  0x68   : > { %p4247_p5 = por %p439_p4, %p103_p12  ;;  %p445_p10 = scmp.eq.s32.totalorder %s5025_s15, 1 }
  0x69   : > { %s5084_s27 = scalar_select %p4243_p9, 1, 0 }
  0x6a   : > { %s5085_s29 = scalar_select %p4247_p5, 1, 0 }
  0x6b   : > { %s4254_s20 = scalar_select %p94_p7, %s3970_s23, %s96_s19  }
  0x6c   : > { %5086 = sst [smem:[#allocation39_spill]] %s5085_s29  ;;  %p4256_p11 = por %p445_p10, %p109_p2 }
  0x6d   : > { %5087 = sst [smem:[#allocation40_spill]] %s4254_s20  ;;  %p3399_p13 = scmp.lt.s32.totalorder %s3982_s25, 2 }
  0x6e   : > { %s5088_s28 = scalar_select %p4256_p11, 1, 0 }
  0x6f   : > { %s4262_s13 = sand.u32 1, %s3970_s23   ;;  %s5033_s14 = sshll.u32 %s3978_s2, 6 }
  0x70   : > { %5089 = sst [smem:[#allocation41_spill]] %s5088_s28  ;;  %s5032_s30 = sshll.u32 %s4262_s13, 2 }
  0x71   : > { %p4268_p12 = pnand %p3399_p13, %p4232_p0  ;;  %s687_s15 = sand.u32 1, %s3982_s25  }
  0x72   : > { %s5091_s7 = sld [smem:[#allocation44_spill]]  ;;  %s691_s17 = scalar_lea.vmem [#allocation9], %s5032_s30 }
  0x73   : > { %s5090_s0 = scalar_select %p4268_p12, 1, 0 }
  0x74   : > { %s698_s20 = sshll.u32 %s691_s17, 4  ;;  %s4284_s21 = scalar_lea.sflag [#allocation10], %s687_s15  ;;  %s4282_s20 = int_to_ptr.vmem [resolvable:$true] %s698_s20 }
  0x75   : > { %p4290_p2 = pneg %p4268_p12 }
  0x77   : > { %s5092_s25 = scalar_select %p4290_p2, 1, 0 }
  0x78   : > { %s4278_s10 = scalar_lea.hbm %s5091_s7, %s5033_s14  ;;  %s3595_s30 = scalar_lea.hbm %s5091_s7, 128 }
  0x79   : > { %s3590_s23 = scalar_lea.hbm %s4278_s10, 64  ;;  %p3596_p10 = scmp.lt.u32.totalorder %s4278_s10, %s5091_s7 }
  0x7a   : > { %p3591_p0 = scmp.ne.s32.totalorder %s4278_s10, %s3590_s23  ;;  %p3597_p13 = scmp.lt.u32.totalorder %s3595_s30, %s3590_s23 }
  0x7b   : > { %p3599_p11 = scmp.lt.u32.totalorder %s3590_s23, %s4278_s10 }
  0x7c   : > { %p3593_p4 = pnand %p4290_p2, %p3591_p0  ;;  %p3598_p1 = por %p3597_p13, %p3596_p10 }
  0x7e   : > { %p3594_p7 = pneg %p3593_p4  ;;  %p3600_p5 = por %p3599_p11, %p3598_p1 }
  0x80   : > { %p3601_p9 = pnand %p3600_p5, %p3594_p7 }
  0x82   : > { %3604 = shalt.err (!%p3601_p9)
}
  0x83   : > { %s3605_s15 = scalar_lea.vmem %s4282_s20, 64  ;;  %s3988_s16 = smov [#allocation9]  }
  0x84   : > { %p3606_p0 = scmp.ne.s32.totalorder %s4282_s20, %s3605_s15  ;;  %s3610_s19 = sshll.u32 %s3988_s16, 4  ;;  %s3611_s19 = int_to_ptr.vmem [resolvable:$false] %s3610_s19 }
  0x85   : > { %s3612_s14 = scalar_lea.vmem %s3611_s19, 128  ;;  %p3613_p6 = scmp.lt.s32.totalorder %s4282_s20, %s3611_s19 }
  0x86   : > { %p3608_p4 = pnand %p3606_p0, %p4290_p2  ;;  %p3614_p8 = scmp.lt.s32.totalorder %s3612_s14, %s3605_s15 }
  0x88   : > { %p3609_p3 = pneg %p3608_p4  ;;  %p3615_p10 = por %p3614_p8, %p3613_p6 }
  0x8a   : > { %p3616_p13 = pnand %p3615_p10, %p3609_p3 }
  0x8c   : > { %3619 = shalt.err (!%p3616_p13)
}
  0x8d   : > { %3374 = dma.hbm_to_vmem [thread:$0]  (!%p4268_p12), %s4278_s10, 64, %s4282_s20, %s4284_s21  }
  0x8e   : > { %s3989_s23 = smov [#allocation14]   ;;  %s3990_s17 = smov [#allocation17]  }
  0x8f   : > { %s594_s30 = sshll.u32 %s3989_s23, 4  ;;  %s623_s7 = sshll.u32 %s3990_s17, 4  ;;  %s595_s30 = int_to_ptr.vmem [resolvable:$true] %s594_s30  ;;  %s624_s7 = int_to_ptr.vmem [resolvable:$true] %s623_s7 }
  0x90   : > { %s5093_s8 = sld [smem:[#allocation50_spill]]  ;;  %p5094_p3 = scmp.ne.s32.totalorder %s5080_s18, 0 }
  0x96   : > { %s3620_s19 = scalar_lea.hbm %s5093_s8, 256 }
  0x97   : > { %p3621_p1 = scmp.ne.s32.totalorder %s5093_s8, %s3620_s19  ;;  %p3627_p9 = scmp.lt.u32.totalorder %s3620_s19, %s5093_s8 }
  0x99   : > { %p3623_p6 = pnand %p3621_p1, %p5094_p3 }
  0x9b   : > { %p3624_p8 = pneg %p3623_p6 }
  0x9d   : > { %p3629_p5 = pnand %p3627_p9, %p3624_p8 }
  0x9f   : > { %3632 = shalt.err (!%p3629_p5)
}
  0xa0   : > { %s3633_s10 = scalar_lea.vmem %s595_s30, 256  ;;  %p3641_p4 = scmp.lt.s32.totalorder %s595_s30, %s595_s30 }
  0xa1   : > { %p3634_p11 = scmp.ne.s32.totalorder %s595_s30, %s3633_s10  ;;  %p3642_p10 = scmp.lt.s32.totalorder %s3633_s10, %s3633_s10 }
  0xa3   : > { %p3636_p7 = pnand %p3634_p11, %p5094_p3  ;;  %p3643_p13 = por %p3642_p10, %p3641_p4 }
  0xa5   : > { %p3637_p0 = pneg %p3636_p7 }
  0xa7   : > { %p3644_p12 = pnand %p3643_p13, %p3637_p0 }
  0xa9   : > { %3647 = shalt.err (!%p3644_p12)
}
  0xaa   : > { %p5095_p1 = scmp.ne.s32.totalorder %s5078_s4, 0  ;;  %s5096_s20 = smov 4  }
  0xab   : > { %s5097_s28 = smov 64   ;;  %s5098_s11 = sld [smem:[#allocation52_spill]] }
  0xac   : > { %3358 = dma.hbm_to_vmem [thread:$0]  (!%p5095_p1), %s5093_s8, 256, %s595_s30, [#allocation13], %s5097_s28, %s5097_s28, %s5096_s20  }
  0xb1   : > { %s3648_s16 = scalar_lea.hbm %s5098_s11, 256 }
  0xb2   : > { %p3649_p6 = scmp.ne.s32.totalorder %s5098_s11, %s3648_s16  ;;  %p3655_p9 = scmp.lt.u32.totalorder %s3648_s16, %s5098_s11 }
  0xb4   : > { %p3651_p12 = pnand %p3649_p6, %p5094_p3 }
  0xb6   : > { %p3652_p8 = pneg %p3651_p12 }
  0xb8   : > { %p3657_p5 = pnand %p3655_p9, %p3652_p8 }
  0xba   : > { %3660 = shalt.err (!%p3657_p5)
}
  0xbb   : > { %s3661_s1 = scalar_lea.vmem %s624_s7, 256  ;;  %p3669_p4 = scmp.lt.s32.totalorder %s624_s7, %s624_s7 }
  0xbc   : > { %p3662_p11 = scmp.ne.s32.totalorder %s624_s7, %s3661_s1  ;;  %p3670_p10 = scmp.lt.s32.totalorder %s3661_s1, %s3661_s1 }
  0xbe   : > { %p3664_p7 = pnand %p3662_p11, %p5094_p3  ;;  %p3671_p13 = por %p3670_p10, %p3669_p4 }
  0xc0   : > { %p3665_p0 = pneg %p3664_p7 }
  0xc2   : > { %p3672_p2 = pnand %p3671_p13, %p3665_p0 }
  0xc4   : > { %3675 = shalt.err (!%p3672_p2)
}
  0xc5   : > { %3364 = dma.hbm_to_vmem [thread:$0]  (!%p5095_p1), %s5098_s11, 256, %s624_s7, [#allocation16], %s5097_s28, %s5097_s28, %s5096_s20  }
  0xc6   : > { %s3991_s23 = smov [#allocation18]   ;;  %s3676_s15 = scalar_lea.hbm %s5003_s12, 256 }
  0xc7   : > { %s636_s17 = sshll.u32 %s3991_s23, 4  ;;  %p3677_p2 = scmp.ne.s32.totalorder %s5003_s12, %s3676_s15  ;;  %s637_s17 = int_to_ptr.vmem [resolvable:$true] %s636_s17 }
  0xc8   : > { %p3683_p8 = scmp.lt.u32.totalorder %s3676_s15, %s5003_s12 }
  0xc9   : > { %p3679_p6 = pnand %p3677_p2, %p5094_p3 }
  0xcb   : > { %p3680_p12 = pneg %p3679_p6 }
  0xcd   : > { %p3685_p9 = pnand %p3683_p8, %p3680_p12 }
  0xcf   : > { %3688 = shalt.err (!%p3685_p9)
}
  0xd0   : > { %s3689_s7 = scalar_lea.vmem %s637_s17, 256  ;;  %p3697_p0 = scmp.lt.s32.totalorder %s637_s17, %s637_s17 }
  0xd1   : > { %p3690_p5 = scmp.ne.s32.totalorder %s637_s17, %s3689_s7  ;;  %p3698_p4 = scmp.lt.s32.totalorder %s3689_s7, %s3689_s7 }
  0xd3   : > { %p3692_p11 = pnand %p3690_p5, %p5094_p3  ;;  %p3699_p10 = por %p3698_p4, %p3697_p0 }
  0xd5   : > { %p3693_p7 = pneg %p3692_p11 }
  0xd7   : > { %p3700_p13 = pnand %p3699_p10, %p3693_p7 }
  0xd9   : > { %3703 = shalt.err (!%p3700_p13)
}
  0xda   : > { %3367 = dma.hbm_to_vmem [thread:$0]  (!%p5095_p1), %s5003_s12, 256, %s637_s17, [#allocation19], %s5097_s28, %s5097_s28, %s5096_s20  }
  0xdb   : > { %s5099_s18 = sshll.u32 %s3978_s2, 6  ;;  %s5100_s16 = sld [smem:[#allocation43_spill]] }
  0xdc   : > { %s5101_s15 = sshll.u32 %s4262_s13, 2  ;;  %s670_s10 = scalar_lea.sflag [#allocation7], %s4262_s13 }
  0xdd   : > { %s673_s4 = scalar_lea.vmem [#allocation6], %s5101_s15  ;;  %p5102_p2 = scmp.ne.s32.totalorder %s5092_s25, 0 }
  0xde   : > { %s680_s14 = sshll.u32 %s673_s4, 4  ;;  %s681_s14 = int_to_ptr.vmem [resolvable:$true] %s680_s14 }
  0xe1   : > { %s4382_s19 = scalar_lea.hbm %s5100_s16, %s5099_s18  ;;  %s3709_s17 = scalar_lea.hbm %s5100_s16, 128 }
  0xe2   : > { %s3704_s1 = scalar_lea.hbm %s4382_s19, 64  ;;  %p3710_p12 = scmp.lt.u32.totalorder %s4382_s19, %s5100_s16 }
  0xe3   : > { %p3705_p3 = scmp.ne.s32.totalorder %s4382_s19, %s3704_s1  ;;  %p3711_p8 = scmp.lt.u32.totalorder %s3709_s17, %s3704_s1 }
  0xe4   : > { %p3713_p5 = scmp.lt.u32.totalorder %s3704_s1, %s4382_s19 }
  0xe5   : > { %p3707_p6 = pnand %p3705_p3, %p5102_p2  ;;  %p3712_p9 = por %p3711_p8, %p3710_p12 }
  0xe7   : > { %p3708_p1 = pneg %p3707_p6  ;;  %p3714_p11 = por %p3713_p5, %p3712_p9 }
  0xe9   : > { %p3715_p7 = pnand %p3714_p11, %p3708_p1 }
  0xeb   : > { %3718 = shalt.err (!%p3715_p7)
}
  0xec   : > { %s3719_s30 = scalar_lea.vmem %s681_s14, 64  ;;  %s3992_s18 = smov [#allocation6]  }
  0xed   : > { %p3720_p0 = scmp.ne.s32.totalorder %s681_s14, %s3719_s30  ;;  %s3724_s29 = sshll.u32 %s3992_s18, 4  ;;  %s3725_s29 = int_to_ptr.vmem [resolvable:$false] %s3724_s29 }
  0xee   : > { %s3726_s23 = scalar_lea.vmem %s3725_s29, 128  ;;  %p3727_p13 = scmp.lt.s32.totalorder %s681_s14, %s3725_s29 }
  0xef   : > { %p3722_p4 = pnand %p3720_p0, %p5102_p2  ;;  %p3728_p3 = scmp.lt.s32.totalorder %s3726_s23, %s3719_s30 }
  0xf1   : > { %p3723_p10 = pneg %p3722_p4  ;;  %p3729_p6 = por %p3728_p3, %p3727_p13 }
  0xf3   : > { %p3730_p8 = pnand %p3729_p6, %p3723_p10 }
  0xf5   : > { %3733 = shalt.err (!%p3730_p8)
}
  0xf6   : > { %p5103_p12 = scmp.ne.s32.totalorder %s5090_s0, 0  ;;  %s2992_s15 = sshll.u32 %s3978_s2, 4 }
  0xf7   : > { %s708_s4 = scalar_lea.vmem [#allocation11], %s4262_s13  ;;  %s5104_s17 = sld [smem:[#allocation45_spill]] }
  0xf8   : > { %3371 = dma.hbm_to_vmem [thread:$0]  (!%p5103_p12), %s4382_s19, 64, %s681_s14, %s670_s10  }
  0xf9   : > { %s715_s1 = sshll.u32 %s708_s4, 4  ;;  %s716_s1 = int_to_ptr.vmem [resolvable:$true] %s715_s1 }
  0xfd   : > { %s713_s7 = scalar_lea.hbm %s5104_s17, %s2992_s15  ;;  %s3739_s29 = scalar_lea.hbm %s5104_s17, 32 }
  0xfe   : > { %s3734_s8 = scalar_lea.hbm %s713_s7, 16  ;;  %p3740_p11 = scmp.lt.u32.totalorder %s713_s7, %s5104_s17 }
  0xff   : > { %p3735_p1 = scmp.ne.s32.totalorder %s713_s7, %s3734_s8  ;;  %p3741_p7 = scmp.lt.u32.totalorder %s3739_s29, %s3734_s8 }
 0x100   : > { %p3743_p4 = scmp.lt.u32.totalorder %s3734_s8, %s713_s7 }
 0x101   : > { %p3737_p9 = pnand %p3735_p1, %p5102_p2  ;;  %p3742_p0 = por %p3741_p7, %p3740_p11 }
 0x103   : > { %p3738_p5 = pneg %p3737_p9  ;;  %p3744_p10 = por %p3743_p4, %p3742_p0 }
 0x105   : > { %p3745_p13 = pnand %p3744_p10, %p3738_p5 }
 0x107   : > { %3748 = shalt.err (!%p3745_p13)
}
 0x108   : > { %s3749_s13 = scalar_lea.vmem %s716_s1, 16  ;;  %s3993_s19 = smov [#allocation11]  }
 0x109   : > { %p3750_p3 = scmp.ne.s32.totalorder %s716_s1, %s3749_s13  ;;  %s3754_s14 = sshll.u32 %s3993_s19, 4  ;;  %s3755_s14 = int_to_ptr.vmem [resolvable:$false] %s3754_s14 }
 0x10a   : > { %s3756_s10 = scalar_lea.vmem %s3755_s14, 32  ;;  %p3757_p1 = scmp.lt.s32.totalorder %s716_s1, %s3755_s14 }
 0x10b   : > { %p3752_p6 = pnand %p3750_p3, %p5102_p2  ;;  %p3758_p9 = scmp.lt.s32.totalorder %s3756_s10, %s3749_s13 }
 0x10d   : > { %p3753_p8 = pneg %p3752_p6  ;;  %p3759_p12 = por %p3758_p9, %p3757_p1 }
 0x10f   : > { %p3760_p7 = pnand %p3759_p12, %p3753_p8 }
 0x111   : > { %3763 = shalt.err (!%p3760_p7)
}
 0x112   : > { %p5105_p11 = scmp.ne.s32.totalorder %s5090_s0, 0  ;;  %p5106_p5 = scmp.ne.s32.totalorder %s5077_s26, 0 }
 0x113   : > { %s4425_s11 = sand.u32 (!%p5106_p5), 1, %s3966_s22   ;;  %p5107_p2 = scmp.ne.s32.totalorder (!%p5106_p5), %s5084_s27, 0 }
 0x114   : > { %3377 = dma.hbm_to_vmem [thread:$0]  (!%p5105_p11), %s713_s7, 16, %s716_s1, %s4284_s21  }
 0x115   : > { %724 = sbr.rel (%p5106_p5) target bundleno = 4569 (0x11d9), region = 84  ;;  %s4428_s25 = sshll.u32 (!%p5106_p5), %s4425_s11, 2 }
 0x116   : > { %s727_s15 = scalar_lea.sflag (!%p5106_p5), [#allocation7], %s4425_s11  ;;  %s730_s4 = scalar_lea.vmem (!%p5106_p5), [#allocation6], %s4428_s25 }
 0x11c   : > { %3929 = dma.done.wait (%p5107_p2), %s727_s15, 64  }
 0x11d   : > { %3931 = vsyncadd (%p5107_p2), %s727_s15, 4294967232  ;;  %s4437_s26 = sand.u32 1, %s4144_s3   ;;  %s739_s21 = scalar_lea.vmem [#allocation9], %s4428_s25 }
 0x11e   : > { %s736_s0 = scalar_lea.sflag [#allocation10], %s4437_s26 }
 0x11f   : > { %3933 = dma.done.wait (%p5107_p2), %s736_s0, 80  }
 0x120   : > { %3935 = vsyncadd (%p5107_p2), %s736_s0, 4294967216  ;;  %s747_s1 = scalar_lea.vmem [#allocation11], %s4425_s11  ;;  %p5108_p12 = scmp.eq.s32.totalorder %s4144_s3, 0 }
 0x122   : > { %3937 = dma.done.wait (%p5108_p12), [#allocation13], 512   ;;  %p5109_p0 = pmov %p5108_p12 }
 0x124   : > { %3939 = vsyncadd (%p5109_p0), [#allocation13], 4294966784  ;;  %p5110_p4 = pmov %p5109_p0 }
 0x125   : > { %p5111_p10 = pmov %p5109_p0 }
 0x126   : > { %3941 = dma.done.wait (%p5110_p4), [#allocation16], 512  }
 0x127   : > { %3943 = vsyncadd (%p5111_p10), [#allocation16], 4294966784  ;;  %p5112_p13 = pmov %p5109_p0 }
 0x128   : > { %p5113_p3 = pmov %p5109_p0 }
 0x129   : > { %3945 = dma.done.wait (%p5112_p13), [#allocation19], 256  }
 0x12a   : > { %3947 = vsyncadd (%p5113_p3), [#allocation19], 4294967040  ;;  %v3994_v0 = vmov 0.0   ;;  %vm3995_vm0 = vmmov 0   ;;  %s5114_s5 = sld [smem:[#allocation47_spill]]  ;;  %p860_p6 = scmp.lt.s32.totalorder %s3974_s24, 1  ;;  %v880_v15 = vlaneseq }
 0x12b   : > { %3136 = vmatprep.subr.bf16.mxu0 %v3994_v0  ;;  %3140 = vmatprep.mubr.msk.bf16.mxu0 %vm3995_vm0, %v3994_v0  ;;  %v875_v3 = vld [vmem:[%s730_s4] sm:$0xf]  ;;  %vm896_vm1 = vcmask 261120   ;;  %v3472_v4 = vld [vmem:[%s5000_s9] sm:$0xff]   ;;  %s5115_s6 = sld [smem:[#allocation48_spill]]  ;;  %v3473_v6 = vld [vmem:[%s5000_s9 + $0x8] sm:$0xff]  }
 0x12c   : > { %3144 = vmatprep.subr.bf16.mxu1 %v3994_v0  ;;  %3148 = vmatprep.mubr.msk.bf16.mxu1 %vm3995_vm0, %v3994_v0  ;;  %s861_s7 = scalar_select %p860_p6, %s3974_s24, 1  ;;  %v1005_v8 = vld [vmem:[%s739_s21] sm:$0xf]  ;;  %v3478_v13 = vld [vmem:[#allocation15] sm:$0xff]   ;;  %v3479_v14 = vld [vmem:[#allocation15 + $0x8] sm:$0xff]   ;;  %v4525_v16 = vshrl.u32 %v880_v15, 7 }
 0x12d   : > { %s5116_s0 = sld [smem:[#allocation46_spill]]  ;;  %s5117_s3 = sld [smem:[#allocation42_spill]]  ;;  %vm1001_vm2 = vcmask 257024   ;;  %vm1223_vm3 = vcmask 64512   ;;  %vm1286_vm4 = vcmask 1043456   ;;  %vm1686_vm6 = vcmask 130048  }
 0x12e   : > { %s3006_s19 = sshll.u32 %s861_s7, 3  ;;  %v882_v17 = vsub.s32 1, %v4525_v16  ;;  %s5118_s18 = sld [smem:[#allocation54_spill]]  ;;  %v1012_v23 = vsub.s32 7, %v4525_v16  ;;  %v4540_v31 = vsub.s32 0, %v4525_v16  ;;  %v946_v47 = vsub.s32 2, %v4525_v16 }
 0x12f   : > { %s838_s29 = scalar_lea.vmem [#allocation21], %s4428_s25  ;;  %s852_s23 = scalar_lea.vmem [#allocation24], %s4428_s25  ;;  %vm1689_vm7 = vcmask 195584   ;;  %vm2511_vm10 = vcmask 523264  }
 0x130   : > { %v3470_v1 = vld [vmem:[%s5114_s5] sm:$0xff]   ;;  %v3471_v2 = vld [vmem:[%s5114_s5 + $0x8] sm:$0xff]   ;;  %s3996_s13 = smov 112   ;;  %s3998_s14 = smov 104  }
 0x131   : > { %3137 = vmatpush3.bf16.msra.mxu0 %v3470_v1  ;;  %v3476_v5 = vld [vmem:[%s5115_s6] sm:$0xff]   ;;  %v3477_v7 = vld [vmem:[%s5115_s6 + $0x8] sm:$0xff]   ;;  %s5052_s4 = scalar_lea.vmem [#allocation23], %s4428_s25  ;;  %s5051_s27 = scalar_lea.vmem [#allocation26], %s4428_s25 }
 0x132   : > { %3138 = vmatprep.subr.bf16.mxu0 %v3994_v0  ;;  %3145 = vmatpush3.bf16.msra.mxu1 %v3476_v5  ;;  %s3999_s20 = smov 8   ;;  %s5121_s8 = sld [smem:[#allocation53_spill]] }
 0x133   : > { %3146 = vmatprep.subr.bf16.mxu1 %v3994_v0  ;;  %v3474_v9 = vld [vmem:[%s5116_s0] sm:$0xff]   ;;  %s866_s28 = scalar_lea.vmem %s5117_s3, %s3006_s19  ;;  %v3475_v10 = vld [vmem:[%s5116_s0 + $0x8] sm:$0xff]   ;;  %s3997_s19 = smov 120  }
 0x134   : > { %v4510_v11 = vld [vmem:[%s866_s28] sm:$0xff]  ;;  %v4572_v55 = vld [vmem:[%s5118_s18 + $0x8] sm:$0x7f]  ;;  %s4000_s3 = smov 16   ;;  %s4001_s28 = smov 24  }
 0x135   : > { %3139 = vmatpush3.bf16.msra.mxu0 %v3471_v2  ;;  %v1147_v12 = vpack.c.bf16 %v4510_v11, %v4510_v11  ;;  %v4531_v18 = vld [vmem:[%s5118_s18] sm:$0xff]  ;;  %v1076_v56 = vrot.slane %v4572_v55, %v4540_v31  ;;  %s5124_s30 = sld [smem:[#allocation57_spill]]  ;;  %s4003_s15 = smov [#allocation21]  }
 0x136   : > { %3152 = vmatprep.subr.bf16.mxu0 %v3994_v0  ;;  %3147 = vmatpush3.bf16.msra.mxu1 %v3477_v7  ;;  %v883_v19 = vrot.slane %v4531_v18, %v882_v17  ;;  %v1013_v27 = vrot.slane %v4531_v18, %v1012_v23  ;;  %v1155_v39 = vrot.slane %v4531_v18, %v4540_v31 }
 0x137   : > { %3160 = vmatprep.subr.bf16.mxu1 %v3994_v0  ;;  %v947_v50 = vrot.slane %v4531_v18, %v946_v47 }
 0x138   : > { %3141 = vmatmul.mubr.msk.bf16.vlgmr.msra.gmra.mrb[0].mxu0 %vm896_vm1, %v875_v3 }
 0x139   : > { %3153 = vmatpush3.bf16.msra.mxu0 %v3472_v4  ;;  %3156 = vmatprep.mubr.msk.bf16.mxu0 %vm3995_vm0, %v3994_v0 }
 0x13a   : > { %3154 = vmatprep.subr.bf16.mxu0 %v3994_v0  ;;  %3149 = vmatmul.mubr.msk.bf16.vlgmr.msra.gmra.mrb[0].mxu1 %vm896_vm1, %v875_v3 }
 0x13b   : > { %3164 = vmatprep.mubr.msk.bf16.mxu1 %vm3995_vm0, %v3994_v0  ;;  %3161 = vmatpush3.bf16.msra.mxu1 %v3478_v13  ;;  %v1218_v13 = vand.u32 127, %v880_v15 }
 0x13c   : > { %3162 = vmatprep.subr.bf16.mxu1 %v3994_v0 }
 0x13d   : > { %3155 = vmatpush3.bf16.msra.mxu0 %v3473_v6  ;;  %vm1219_vm5 = vcmp.gt.s32.totalorder %v1218_v13, %v4525_v16 }
 0x13e   : > { %3168 = vmatprep.subr.bf16.mxu0 %v3994_v0 }
 0x13f   : > { %3163 = vmatpush3.bf16.msra.mxu1 %v3479_v14 }
 0x140   : > { %3157 = vmatmul.mubr.msk.bf16.vlgmr.msra.gmra.mrb[4].mxu0 %vm896_vm1, %v1005_v8  ;;  %3176 = vmatprep.subr.bf16.mxu1 %v3994_v0 }
 0x141   : > { %3169 = vmatpush3.bf16.msra.mxu0 %v3474_v9  ;;  %3172 = vmatprep.mubr.msk.bf16.mxu0 %vm3995_vm0, %v3994_v0 }
 0x142   : > { %3170 = vmatprep.subr.bf16.mxu0 %v3994_v0  ;;  %3165 = vmatmul.mubr.msk.bf16.vlgmr.msra.gmra.mrb[4].mxu1 %vm896_vm1, %v1005_v8 }
 0x143   : > { %3178 = vmatprep.mubr.msk.bf16.mxu1 %vm3995_vm0, %v3994_v0 }
 0x145   : > { %3171 = vmatpush3.bf16.msra.mxu0 %v3475_v10 }
 0x146   : > { %3182 = vmatprep.subr.bf16.mxu0 %v3994_v0 }
 0x148   : > { %3173 = vmatmul.mubr.msk.bf16.vlgmr.msra.gmra.mrb[8].mxu0 %vm896_vm1, %v1147_v12 }
 0x149   : > { %3184 = vmatprep.mubr.msk.bf16.mxu0 %vm3995_vm0, %v3994_v0 }
 0x20b   : > { %v934_v20 = vpop.f32.mrb[0].mxu0 }
 0x20c   : > { %v935_v21 = vadd.f32 %v934_v20, %v883_v19  ;;  %v3142_v22 = vpop.f32.mrb[1].mxu0 }
 0x20d   : > { %v937_v24 = vpop.f32.mrb[2].mxu0  ;;  %v994_v48 = vpop.f32.mrb[0].mxu1 }
 0x20e   : > { %v1000_v25 = vpack.c.bf16 %v935_v21, %v935_v21  ;;  %v3143_v26 = vpop.f32.mrb[3].mxu0  ;;  %v3150_v49 = vpop.f32.mrb[1].mxu1  ;;  %v995_v53 = vadd.f32 %v994_v48, %v947_v50 }
 0x20f   : > { %v997_v51 = vpop.f32.mrb[2].mxu1 }
 0x210   : > { %1002 = vst.msk [vmem:[#allocation2] sm:$0xf] %vm1001_vm2, %v1000_v25  ;;  %v3151_v52 = vpop.f32.mrb[3].mxu1  ;;  %v1003_v54 = vpack.c.bf16 %v995_v53, %v995_v53 }
 0x212   : > { %1004 = vst.msk [vmem:[#allocation3] sm:$0xf] %vm1001_vm2, %v1003_v54 }
 0x213   : > { %v1063_v28 = vpop.f32.mrb[4].mxu0 }
 0x214   : > { %v1064_v29 = vadd.f32 %v1063_v28, %v1013_v27  ;;  %v3158_v30 = vpop.f32.mrb[5].mxu0 }
 0x215   : > { %v1066_v32 = vpop.f32.mrb[6].mxu0  ;;  %v1123_v57 = vpop.f32.mrb[4].mxu1 }
 0x216   : > { %v1129_v33 = vpack.c.bf16 %v1064_v29, %v1064_v29  ;;  %v3159_v34 = vpop.f32.mrb[7].mxu0  ;;  %v1124_v58 = vadd.f32 %v1123_v57, %v1076_v56  ;;  %v3166_v59 = vpop.f32.mrb[5].mxu1 }
 0x217   : > { %v1220_v35 = vld [vmem:[#allocation2] sm:$0xf]  ;;  %v1126_v60 = vpop.f32.mrb[6].mxu1 }
 0x218   : > { %v1139_v36 = vld [vmem:[#allocation2] sm:$0xf]  ;;  %1131 = vst.msk [vmem:[#allocation4] sm:$0xf] %vm1001_vm2, %v1129_v33  ;;  %v1228_v37 = vsel %vm1223_vm3, %v1220_v35, 0  ;;  %v3024_v38 = vcombine.low %v1220_v35, %v1220_v35  ;;  %v1130_v61 = vpack.c.bf16 %v1124_v58, %v1124_v58  ;;  %v3167_v62 = vpop.f32.mrb[7].mxu1 }
 0x219   : > { %1141 = vst.msk [vmem:[%s838_s29] sm:$0xf] %vm1001_vm2, %v1139_v36  ;;  %1133 = vst.msk [vmem:[%s852_s23] sm:$0xf] %vm1001_vm2, %v1129_v33  ;;  %3177 = vmatpush3.bf16.xpose.msra.mxu1 %v1228_v37  ;;  %v4577_v63 = vld [vmem:[#allocation3] sm:$0xf] }
 0x21a   : > { %1452 = vrot.lane.b32.xlu1 %v3024_v38, %s3996_s13  ;;  %1337 = vrot.lane.b32.xlu0 %v3024_v38, %s3997_s19  ;;  %1132 = vst.msk [vmem:[#allocation5] sm:$0xf] %vm1001_vm2, %v1130_v61  ;;  %v1288_v1 = vsel %vm1286_vm4, %v4577_v63, 0  ;;  %v1144_v12 = vld [vmem:[#allocation3] sm:$0xf]  ;;  %v3026_v48 = vcombine.low %v4577_v63, %v4577_v63 }
 0x21b   : > { %v1206_v40 = vpop.f32.mrb[8].mxu0  ;;  %3188 = vmatprep.subr.bf16.mxu1 %v3994_v0  ;;  %3183 = vmatpush3.bf16.msra.mxu0 %v1288_v1  ;;  %1145 = vst.msk [vmem:[%s5052_s4] sm:$0xf] %vm1001_vm2, %v1144_v12  ;;  %1134 = vst.msk [vmem:[%s5051_s27] sm:$0xf] %vm1001_vm2, %v1130_v61 }
 0x21c   : > { %v1207_v41 = vadd.f32 %v1206_v40, %v1155_v39  ;;  %v3174_v42 = vpop.f32.mrb[9].mxu0  ;;  %3194 = vmatprep.subr.bf16.mxu0 %v3994_v0 }
 0x21d   : > { %v1209_v43 = vpop.f32.mrb[10].mxu0 }
 0x21e   : > { %v1212_v44 = vmul.f32 0.35355338, %v1207_v41  ;;  %v3175_v45 = vpop.f32.mrb[11].mxu0 }
 0x220   : > { %v1222_v46 = vpack.c.bf16 %v1212_v44, %v1212_v44 }
 0x222   : > { %1450 = vrot.lane.b32.xlu1 %v1222_v46, %s3996_s13  ;;  %1332 = vrot.lane.b32.xlu0 %v1222_v46, %s3997_s19 }
 0x223   : > { %3179 = vmatmul.mubr.msk.bf16.vlgmr.msra.gmra.mrb[8].mxu1 %vm1223_vm3, %v1222_v46 }
 0x224   : > { %3190 = vmatprep.mubr.msk.bf16.mxu1 %vm3995_vm0, %v3994_v0 }
 0x226   : > { %1562 = vrot.lane.b32.xlu1 %v1222_v46, %s3998_s14  ;;  %1564 = vrot.lane.b32.xlu0 %v3024_v38, %s3998_s14 }
 0x28c   : > { %v1338_v2 = vpop.permute.xlu0 %1337  ;;  %v1453_v4 = vpop.permute.xlu1 %1452 }
 0x28d   : > { %v1343_v3 = vsel %vm1223_vm3, %v1338_v2, 0  ;;  %v1458_v6 = vsel %vm1223_vm3, %v1453_v4, 0 }
 0x28e   : > { %3189 = vmatpush3.bf16.xpose.msra.mxu1 %v1343_v3 }
 0x28f   : > { %3200 = vmatprep.subr.bf16.mxu1 %v3994_v0 }
 0x294   : > { %v1333_v5 = vpop.permute.xlu0 %1332  ;;  %v1451_v8 = vpop.permute.xlu1 %1450 }
 0x295   : > { %3191 = vmatmul.mubr.msk.bf16.vlgmr.msra.gmra.mrb[12].mxu1 %vm1223_vm3, %v1333_v5 }
 0x296   : > { %3201 = vmatpush3.bf16.xpose.msra.mxu1 %v1458_v6  ;;  %3202 = vmatprep.mubr.msk.bf16.mxu1 %vm3995_vm0, %v3994_v0 }
 0x297   : > { %3212 = vmatprep.subr.bf16.mxu1 %v3994_v0 }
 0x298   : > { %v1565_v7 = vpop.permute.xlu0 %1564  ;;  %v1563_v10 = vpop.permute.xlu1 %1562 }
 0x299   : > { %v1570_v9 = vsel %vm1223_vm3, %v1565_v7, 0 }
 0x29d   : > { %3203 = vmatmul.mubr.msk.bf16.vlgmr.msra.gmra.mrb[16].mxu1 %vm1223_vm3, %v1451_v8 }
 0x29e   : > { %3213 = vmatpush3.bf16.xpose.msra.mxu1 %v1570_v9  ;;  %3214 = vmatprep.mubr.msk.bf16.mxu1 %vm3995_vm0, %v3994_v0 }
 0x29f   : > { %3224 = vmatprep.subr.bf16.mxu1 %v3994_v0 }
 0x2a5   : > { %3215 = vmatmul.mubr.msk.bf16.vlgmr.msra.gmra.mrb[20].mxu1 %vm1223_vm3, %v1563_v10 }
 0x2a6   : > { %3228 = vmatprep.mubr.msk.bf16.mxu1 %vm3995_vm0, %v3994_v0 }
 0x2f6   : > { %v1264_v14 = vpop.f32.mrb[8].mxu1 }
 0x2f7   : > { %v1270_v19 = vsel %vm1219_vm5, -1e+20, %v1264_v14  ;;  %v3180_v20 = vpop.f32.mrb[9].mxu1 }
 0x2f8   : > { %v1267_v21 = vpop.f32.mrb[10].mxu1  ;;  %v1271_v22 = vsel %vm1223_vm3, %v1270_v19, -inf }
 0x2f9   : > { %1272 = vmax.xlane.f32.xlu0 %v1271_v22  ;;  %v3181_v23 = vpop.f32.mrb[11].mxu1 }
 0x368   : > { %v1379_v24 = vpop.f32.mrb[12].mxu1 }
 0x369   : > { %v1385_v25 = vsel %vm1219_vm5, -1e+20, %v1379_v24  ;;  %v3192_v26 = vpop.f32.mrb[13].mxu1 }
 0x36a   : > { %v1382_v27 = vpop.f32.mrb[14].mxu1  ;;  %v1386_v15 = vsel %vm1223_vm3, %v1385_v25, -inf }
 0x36b   : > { %1387 = vmax.xlane.f32.xlu1 %v1386_v15  ;;  %v3193_v28 = vpop.f32.mrb[15].mxu1 }
 0x370   : > { %v1494_v29 = vpop.f32.mrb[16].mxu1 }
 0x371   : > { %v1500_v30 = vsel %vm1219_vm5, -1e+20, %v1494_v29  ;;  %v3204_v32 = vpop.f32.mrb[17].mxu1 }
 0x372   : > { %v1497_v33 = vpop.f32.mrb[18].mxu1  ;;  %v1501_v34 = vsel %vm1223_vm3, %v1500_v30, -inf }
 0x373   : > { %1502 = vmax.xlane.f32.xlu0 %v1501_v34  ;;  %v3205_v35 = vpop.f32.mrb[19].mxu1  ;;  %v3482_v33 = vld [vmem:[#allocation12] sm:$0xff]   ;;  %v3483_v34 = vld [vmem:[#allocation12 + $0x8] sm:$0xff]  }
 0x374   : > { %3225 = vmatpush3.bf16.msra.mxu1 %v3482_v33  ;;  %v1786_v33 = vsub.s32 6, %v4525_v16 }
 0x375   : > { %3226 = vmatprep.subr.bf16.mxu1 %v3994_v0 }
 0x378   : > { %v1606_v36 = vpop.f32.mrb[20].mxu1  ;;  %3227 = vmatpush3.bf16.msra.mxu1 %v3483_v34  ;;  %v1787_v34 = vrot.slane %v4531_v18, %v1786_v33 }
 0x379   : > { %v1612_v37 = vsel %vm1219_vm5, -1e+20, %v1606_v36  ;;  %v3216_v38 = vpop.f32.mrb[21].mxu1  ;;  %3240 = vmatprep.subr.bf16.mxu1 %v3994_v0 }
 0x37a   : > { %v1609_v39 = vpop.f32.mrb[22].mxu1  ;;  %v1613_v40 = vsel %vm1223_vm3, %v1612_v37, -inf }
 0x37b   : > { %1614 = vmax.xlane.f32.xlu0 %v1613_v40  ;;  %v3217_v41 = vpop.f32.mrb[23].mxu1 }
 0x386   : > { %v1273_v42 = vpop.xlane.xlu0 %1272 }
 0x387   : > { %v1274_v43 = vsub.f32 %v1270_v19, %v1273_v42 }
 0x389   : > { %v1275_v44 = vmul.f32 1.442695, %v1274_v43 }
 0x38b   : > { %3496 = vpow2.f32 %v1275_v44 }
 0x395   : > { %v3497_v45 = vpop.eup %3496 }
 0x396   : > { %v1277_v46 = vsel %vm1223_vm3, %v3497_v45, 0.0 }
 0x397   : > { %1278 = vadd.xlane.f32.xlu1 %v1277_v46 }
 0x3a8   : > { %1401 = vrot.lane.b32.xlu1 %v3026_v48, %s3997_s19 }
 0x3f8   : > { %v1388_v49 = vpop.xlane.xlu1 %1387 }
 0x3f9   : > { %v1389_v50 = vsub.f32 %v1385_v25, %v1388_v49 }
 0x3fb   : > { %v1390_v51 = vmul.f32 1.442695, %v1389_v50 }
 0x3fd   : > { %3498 = vpow2.f32 %v1390_v51 }
 0x400   : > { %v1503_v52 = vpop.xlane.xlu0 %1502 }
 0x401   : > { %v1504_v53 = vsub.f32 %v1500_v30, %v1503_v52 }
 0x403   : > { %v1505_v54 = vmul.f32 1.442695, %v1504_v53 }
 0x405   : > { %3500 = vpow2.f32 %v1505_v54 }
 0x407   : > { %v3499_v56 = vpop.eup %3498 }
 0x408   : > { %v1615_v57 = vpop.xlane.xlu0 %1614  ;;  %v1392_v58 = vsel %vm1223_vm3, %v3499_v56, 0.0 }
 0x409   : > { %v1616_v59 = vsub.f32 %v1612_v37, %v1615_v57  ;;  %1393 = vadd.xlane.f32.xlu0 %v1392_v58 }
 0x40b   : > { %v1617_v60 = vmul.f32 1.442695, %v1616_v59 }
 0x40d   : > { %3502 = vpow2.f32 %v1617_v60 }
 0x40f   : > { %v3501_v61 = vpop.eup %3500 }
 0x410   : > { %v1507_v62 = vsel %vm1223_vm3, %v3501_v61, 0.0 }
 0x411   : > { %1508 = vadd.xlane.f32.xlu1 %v1507_v62 }
 0x417   : > { %v3503_v63 = vpop.eup %3502 }
 0x418   : > { %v1619_v1 = vsel %vm1223_vm3, %v3503_v63, 0.0 }
 0x419   : > { %1620 = vadd.xlane.f32.xlu0 %v1619_v1 }
 0x422   : > { %1625 = vrot.lane.b32.xlu1 %v3026_v48, %s3998_s14 }
 0x424   : > { %v1279_v2 = vpop.xlane.xlu1 %1278 }
 0x425   : > { %3504 = vrcp.f32 %v1279_v2 }
 0x428   : > { %v1402_v5 = vpop.permute.xlu1 %1401 }
 0x429   : > { %v1407_v7 = vsel %vm1286_vm4, %v1402_v5, 0 }
 0x42f   : > { %v3505_v3 = vpop.eup %3504  ;;  %1513 = vrot.lane.b32.xlu0 %v3026_v48, %s3996_s13 }
 0x430   : > { %v1281_v4 = vmul.f32 %v3505_v3, %v3497_v45 }
 0x432   : > { %v1282_v6 = vpack.c.bf16 %v1281_v4, %v1281_v4 }
 0x434   : > { %3185 = vmatmul.mubr.msk.bf16.vlgmr.msra.gmra.mrb[12].mxu0 %vm1223_vm3, %v1282_v6 }
 0x435   : > { %3195 = vmatpush3.bf16.msra.mxu0 %v1407_v7  ;;  %3196 = vmatprep.mubr.msk.bf16.mxu0 %vm3995_vm0, %v3994_v0 }
 0x436   : > { %3206 = vmatprep.subr.bf16.mxu0 %v3994_v0 }
 0x496   : > { %v1394_v8 = vpop.xlane.xlu0 %1393 }
 0x497   : > { %3506 = vrcp.f32 %v1394_v8 }
 0x49e   : > { %v1509_v9 = vpop.xlane.xlu1 %1508 }
 0x49f   : > { %3508 = vrcp.f32 %v1509_v9 }
 0x4a1   : > { %v3507_v10 = vpop.eup %3506 }
 0x4a2   : > { %v1396_v12 = vmul.f32 %v3507_v10, %v3499_v56  ;;  %v1626_v23 = vpop.permute.xlu1 %1625  ;;  %v1852_v56 = vld [vmem:[#allocation4] sm:$0xf] }
 0x4a3   : > { %v1631_v25 = vsel %vm1286_vm4, %v1626_v23, 0  ;;  %v1859_v60 = vsel %vm1223_vm3, %v1852_v56, 0  ;;  %v3040_v7 = vcombine.low %v1852_v56, %v1852_v56  ;;  %v1776_v23 = vsub.s32 5, %v4525_v16 }
 0x4a4   : > { %v1397_v13 = vpack.c.bf16 %v1396_v12, %v1396_v12 }
 0x4a6   : > { %3197 = vmatmul.mubr.msk.bf16.vlgmr.msra.gmra.mrb[16].mxu0 %vm1223_vm3, %v1397_v13  ;;  %v1621_v14 = vpop.xlane.xlu0 %1620 }
 0x4a7   : > { %3510 = vrcp.f32 %v1621_v14  ;;  %3208 = vmatprep.mubr.msk.bf16.mxu0 %vm3995_vm0, %v3994_v0  ;;  %v3485_v14 = vld [vmem:[#allocation14] sm:$0xff]  }
 0x4a9   : > { %v3509_v19 = vpop.eup %3508 }
 0x4aa   : > { %v1511_v20 = vmul.f32 %v3509_v19, %v3501_v61  ;;  %v1514_v21 = vpop.permute.xlu0 %1513  ;;  %v1698_v61 = vsub.s32 3, %v4525_v16 }
 0x4ab   : > { %v1519_v22 = vsel %vm1286_vm4, %v1514_v21, 0 }
 0x4ac   : > { %3207 = vmatpush3.bf16.msra.mxu0 %v1519_v22  ;;  %v1512_v24 = vpack.c.bf16 %v1511_v20, %v1511_v20  ;;  %v1699_v62 = vrot.slane %v4531_v18, %v1698_v61  ;;  %v1771_v22 = vsub.s32 4, %v4525_v16 }
 0x4ad   : > { %3218 = vmatprep.subr.bf16.mxu0 %v3994_v0 }
 0x4af   : > { %3209 = vmatmul.mubr.msk.bf16.vlgmr.msra.gmra.mrb[20].mxu0 %vm1223_vm3, %v1512_v24  ;;  %v1772_v24 = vrot.slane %v4531_v18, %v1771_v22 }
 0x4b0   : > { %3219 = vmatpush3.bf16.msra.mxu0 %v1631_v25  ;;  %3220 = vmatprep.mubr.msk.bf16.mxu0 %vm3995_vm0, %v3994_v0 }
 0x4b1   : > { %v3511_v26 = vpop.eup %3510  ;;  %3232 = vmatprep.subr.bf16.mxu0 %v3994_v0 }
 0x4b2   : > { %v1623_v27 = vmul.f32 %v3511_v26, %v3503_v63 }
 0x4b4   : > { %v1624_v15 = vpack.c.bf16 %v1623_v27, %v1623_v27  ;;  %v1777_v27 = vrot.slane %v4531_v18, %v1776_v23 }
 0x4b7   : > { %3221 = vmatmul.mubr.msk.bf16.vlgmr.msra.gmra.mrb[24].mxu0 %vm1223_vm3, %v1624_v15 }
 0x4b8   : > { %3236 = vmatprep.mubr.msk.bf16.mxu0 %vm3995_vm0, %v3994_v0  ;;  %3233 = vmatpush3.bf16.msra.mxu0 %v3485_v14 }
 0x4b9   : > { %3234 = vmatprep.subr.bf16.mxu0 %v3994_v0 }
 0x507   : > { %v1324_v28 = vpop.f32.mrb[12].mxu0 }
 0x508   : > { %v3186_v29 = vpop.f32.mrb[13].mxu0  ;;  %v1330_v52 = vpack.c.bf16 %v1324_v28, %v1324_v28 }
 0x509   : > { %v1327_v30 = vpop.f32.mrb[14].mxu0  ;;  %v4681_v29 = vld [vmem:[#allocation5] sm:$0xf] }
 0x50a   : > { %v3187_v32 = vpop.f32.mrb[15].mxu0 }
 0x50b   : > { %v1918_v32 = vsel %vm1286_vm4, %v4681_v29, 0 }
 0x579   : > { %v1443_v35 = vpop.f32.mrb[16].mxu0 }
 0x57a   : > { %v1449_v36 = vpack.c.bf16 %v1443_v35, %v1443_v35  ;;  %v3198_v37 = vpop.f32.mrb[17].mxu0 }
 0x57b   : > { %v1446_v38 = vpop.f32.mrb[18].mxu0 }
 0x57c   : > { %1675 = vrot.lane.b32.xlu1 %v1449_v36, %s3999_s20  ;;  %v3199_v39 = vpop.f32.mrb[19].mxu0 }
 0x582   : > { %v1555_v40 = vpop.f32.mrb[20].mxu0 }
 0x583   : > { %v1561_v41 = vpack.c.bf16 %v1555_v40, %v1555_v40  ;;  %v3210_v42 = vpop.f32.mrb[21].mxu0 }
 0x584   : > { %v1558_v43 = vpop.f32.mrb[22].mxu0 }
 0x585   : > { %1678 = vrot.lane.b32.xlu0 %v1561_v41, %s4000_s3  ;;  %v3211_v44 = vpop.f32.mrb[23].mxu0 }
 0x58a   : > { %v1667_v45 = vpop.f32.mrb[24].mxu0 }
 0x58b   : > { %v1673_v46 = vpack.c.bf16 %v1667_v45, %v1667_v45  ;;  %v3222_v48 = vpop.f32.mrb[25].mxu0 }
 0x58c   : > { %v1670_v49 = vpop.f32.mrb[26].mxu0 }
 0x58d   : > { %1681 = vrot.lane.b32.xlu1 %v1673_v46, %s4001_s28  ;;  %v3223_v50 = vpop.f32.mrb[27].mxu0 }
 0x5ee   : > { %v1676_v51 = vpop.permute.xlu1 %1675 }
 0x5ef   : > { %v1685_v54 = vsel %vm1223_vm3, %v1330_v52, %v1676_v51  ;;  %v1844_v51 = vld [vmem:[%s747_s1] sm:$0x1]  ;;  %v4002_v52 = vmov 0   ;;  %s4815_s1 = sshll.u32 %s3974_s24, 6 }
 0x5f0   : > { %vm1845_vm8 = vcmp.eq.f32.partialorder %v1844_v51, 0.0 }
 0x5f7   : > { %v1679_v53 = vpop.permute.xlu0 %1678 }
 0x5f8   : > { %v1688_v57 = vsel %vm1686_vm6, %v1685_v54, %v1679_v53  ;;  %v1846_v53 = vsel %vm1845_vm8, 1, %v4002_v52 }
 0x5f9   : > { %v1850_v54 = vrot.slane %v1846_v53, %v4540_v31 }
 0x5fb   : > { %vm4719_vm9 = vcmp.eq.s32.totalorder %v1850_v54, 1 }
 0x5ff   : > { %v1682_v58 = vpop.permute.xlu1 %1681 }
 0x600   : > { %v1691_v59 = vsel %vm1689_vm7, %v1688_v57, %v1682_v58 }
 0x601   : > { %3229 = vmatmul.mubr.msk.bf16.vlgmr.msra.gmra.mrb[24].mxu1 %vm896_vm1, %v1691_v59 }
 0x602   : > { %3241 = vmatpush3.bf16.xpose.msra.mxu1 %v1859_v60  ;;  %3242 = vmatprep.mubr.msk.bf16.mxu1 %vm3995_vm0, %v3994_v0 }
 0x603   : > { %3252 = vmatprep.subr.bf16.mxu1 %v3994_v0 }
 0x6d4   : > { %v1748_v63 = vpop.f32.mrb[24].mxu1 }
 0x6d5   : > { %v1749_v1 = vadd.f32 %v1748_v63, %v1699_v62  ;;  %v3230_v2 = vpop.f32.mrb[25].mxu1 }
 0x6d6   : > { %v1751_v3 = vpop.f32.mrb[26].mxu1 }
 0x6d7   : > { %v3231_v4 = vpop.f32.mrb[27].mxu1  ;;  %v1754_v5 = vadd.f32 %v1749_v1, %v4510_v11  ;;  %v3486_v11 = vld [vmem:[#allocation14 + $0x8] sm:$0xff]  }
 0x6d8   : > { %3235 = vmatpush3.bf16.msra.mxu0 %v3486_v11 }
 0x6d9   : > { %v1755_v6 = vsel %vm896_vm1, %v1754_v5, 0.0  ;;  %3246 = vmatprep.subr.bf16.mxu0 %v3994_v0 }
 0x6da   : > { %1756 = vadd.xlane.f32.xlu0 %v1755_v6 }
 0x6f0   : > { %1967 = vrot.lane.b32.xlu0 %v3040_v7, %s3997_s19 }
 0x6f4   : > { %2082 = vrot.lane.b32.xlu0 %v3040_v7, %s3996_s13 }
 0x6f8   : > { %2194 = vrot.lane.b32.xlu0 %v3040_v7, %s3998_s14 }
 0x767   : > { %v1757_v8 = vpop.xlane.xlu0 %1756 }
 0x768   : > { %v1759_v9 = vmul.f32 0.03125, %v1757_v8 }
 0x76a   : > { %v1760_v10 = vsub.f32 %v1754_v5, %v1759_v9 }
 0x76b   : > { %v1968_v41 = vpop.permute.xlu0 %1967 }
 0x76c   : > { %v1761_v12 = vmul.f32 %v1760_v10, %v1760_v10  ;;  %v1973_v43 = vsel %vm1223_vm3, %v1968_v41, 0 }
 0x76e   : > { %v1762_v13 = vsel %vm896_vm1, %v1761_v12, 0.0 }
 0x76f   : > { %1763 = vadd.xlane.f32.xlu1 %v1762_v13  ;;  %v2083_v18 = vpop.permute.xlu0 %2082 }
 0x770   : > { %v2088_v45 = vsel %vm1223_vm3, %v2083_v18, 0 }
 0x773   : > { %v2195_v46 = vpop.permute.xlu0 %2194 }
 0x774   : > { %v2200_v49 = vsel %vm1223_vm3, %v2195_v46, 0 }
 0x7fc   : > { %v1764_v19 = vpop.xlane.xlu1 %1763 }
 0x7fd   : > { %v1765_v20 = vmul.f32 0.03125, %v1764_v19 }
 0x7ff   : > { %v1766_v21 = vadd.f32 1e-05, %v1765_v20 }
 0x801   : > { %3512 = vrsqrt.f32 %v1766_v21 }
 0x80b   : > { %v3513_v25 = vpop.eup %3512 }
 0x80c   : > { %v1768_v26 = vmul.f32 %v3513_v25, %v1760_v10 }
 0x80e   : > { %v1773_v15 = vmul.f32 %v1772_v24, %v1768_v26 }
 0x810   : > { %v4679_v28 = vadd.f32 %v1777_v27, %v1773_v15 }
 0x812   : > { %v1779_v30 = vpack.c.bf16 %v4679_v28, %v4679_v28 }
 0x814   : > { %3237 = vmatmul.mubr.msk.bf16.vlgmr.msra.gmra.mrb[28].mxu0 %vm896_vm1, %v1779_v30  ;;  %v3042_v30 = vcombine.low %v4681_v29, %v4681_v29 }
 0x815   : > { %3247 = vmatpush3.bf16.msra.mxu0 %v1918_v32  ;;  %3248 = vmatprep.mubr.msk.bf16.mxu0 %vm3995_vm0, %v3994_v0 }
 0x816   : > { %3258 = vmatprep.subr.bf16.mxu0 %v3994_v0 }
 0x8e7   : > { %v1837_v35 = vpop.f32.mrb[28].mxu0 }
 0x8e8   : > { %v1838_v36 = vadd.f32 %v1837_v35, %v1787_v34  ;;  %v3238_v37 = vpop.f32.mrb[29].mxu0 }
 0x8e9   : > { %v1840_v38 = vpop.f32.mrb[30].mxu0 }
 0x8ea   : > { %v1843_v39 = vmul.f32 0.35355338, %v1838_v36  ;;  %v3239_v40 = vpop.f32.mrb[31].mxu0 }
 0x8ec   : > { %v1854_v42 = vpack.c.bf16 %v1843_v39, %v1843_v39 }
 0x8ee   : > { %1962 = vrot.lane.b32.xlu1 %v1854_v42, %s3997_s19  ;;  %3243 = vmatmul.mubr.msk.bf16.vlgmr.msra.gmra.mrb[28].mxu1 %vm1223_vm3, %v1854_v42 }
 0x8ef   : > { %3253 = vmatpush3.bf16.xpose.msra.mxu1 %v1973_v43  ;;  %3254 = vmatprep.mubr.msk.bf16.mxu1 %vm3995_vm0, %v3994_v0 }
 0x8f0   : > { %3264 = vmatprep.subr.bf16.mxu1 %v3994_v0 }
 0x8f2   : > { %2080 = vrot.lane.b32.xlu1 %v1854_v42, %s3996_s13 }
 0x8f6   : > { %2192 = vrot.lane.b32.xlu1 %v1854_v42, %s3998_s14 }
 0x960   : > { %v1963_v44 = vpop.permute.xlu1 %1962 }
 0x961   : > { %3255 = vmatmul.mubr.msk.bf16.vlgmr.msra.gmra.mrb[32].mxu1 %vm1223_vm3, %v1963_v44 }
 0x962   : > { %3265 = vmatpush3.bf16.xpose.msra.mxu1 %v2088_v45  ;;  %3266 = vmatprep.mubr.msk.bf16.mxu1 %vm3995_vm0, %v3994_v0 }
 0x963   : > { %3276 = vmatprep.subr.bf16.mxu1 %v3994_v0 }
 0x964   : > { %v2081_v48 = vpop.permute.xlu1 %2080 }
 0x968   : > { %v2193_v50 = vpop.permute.xlu1 %2192 }
 0x969   : > { %3267 = vmatmul.mubr.msk.bf16.vlgmr.msra.gmra.mrb[36].mxu1 %vm1223_vm3, %v2081_v48 }
 0x96a   : > { %3277 = vmatpush3.bf16.xpose.msra.mxu1 %v2200_v49  ;;  %3278 = vmatprep.mubr.msk.bf16.mxu1 %vm3995_vm0, %v3994_v0 }
 0x96b   : > { %3288 = vmatprep.subr.bf16.mxu1 %v3994_v0 }
 0x971   : > { %3279 = vmatmul.mubr.msk.bf16.vlgmr.msra.gmra.mrb[40].mxu1 %vm1223_vm3, %v2193_v50 }
 0x972   : > { %3292 = vmatprep.mubr.msk.bf16.mxu1 %vm3995_vm0, %v3994_v0 }
 0x9c1   : > { %v1895_v57 = vpop.f32.mrb[28].mxu1 }
 0x9c2   : > { %v1901_v58 = vsel %vm4719_vm9, -1e+20, %v1895_v57  ;;  %v3244_v59 = vpop.f32.mrb[29].mxu1 }
 0x9c3   : > { %v1898_v60 = vpop.f32.mrb[30].mxu1  ;;  %v1902_v62 = vsel %vm1223_vm3, %v1901_v58, -inf }
 0x9c4   : > { %1903 = vmax.xlane.f32.xlu0 %v1902_v62  ;;  %v3245_v63 = vpop.f32.mrb[31].mxu1 }
 0xa34   : > { %v2009_v1 = vpop.f32.mrb[32].mxu1 }
 0xa35   : > { %v2015_v2 = vsel %vm4719_vm9, -1e+20, %v2009_v1  ;;  %v3256_v3 = vpop.f32.mrb[33].mxu1 }
 0xa36   : > { %v2012_v31 = vpop.f32.mrb[34].mxu1  ;;  %v2016_v4 = vsel %vm1223_vm3, %v2015_v2, -inf }
 0xa37   : > { %2017 = vmax.xlane.f32.xlu1 %v2016_v4  ;;  %v3257_v5 = vpop.f32.mrb[35].mxu1 }
 0xa3c   : > { %v2124_v6 = vpop.f32.mrb[36].mxu1 }
 0xa3d   : > { %v2130_v7 = vsel %vm4719_vm9, -1e+20, %v2124_v6  ;;  %v3268_v8 = vpop.f32.mrb[37].mxu1 }
 0xa3e   : > { %v2127_v9 = vpop.f32.mrb[38].mxu1  ;;  %v2131_v10 = vsel %vm1223_vm3, %v2130_v7, -inf }
 0xa3f   : > { %2132 = vmax.xlane.f32.xlu0 %v2131_v10  ;;  %v3269_v12 = vpop.f32.mrb[39].mxu1 }
 0xa40   : > { %v3488_v12 = vld [vmem:[#allocation17] sm:$0xff]  }
 0xa41   : > { %3289 = vmatpush3.bf16.msra.mxu1 %v3488_v12 }
 0xa42   : > { %3290 = vmatprep.subr.bf16.mxu1 %v3994_v0 }
 0xa44   : > { %v2236_v13 = vpop.f32.mrb[40].mxu1 }
 0xa45   : > { %v2242_v14 = vsel %vm4719_vm9, -1e+20, %v2236_v13  ;;  %v3280_v11 = vpop.f32.mrb[41].mxu1 }
 0xa46   : > { %v2239_v19 = vpop.f32.mrb[42].mxu1  ;;  %v2243_v20 = vsel %vm1223_vm3, %v2242_v14, -inf }
 0xa47   : > { %2244 = vmax.xlane.f32.xlu0 %v2243_v20  ;;  %v3281_v21 = vpop.f32.mrb[43].mxu1  ;;  %v3489_v19 = vld [vmem:[#allocation17 + $0x8] sm:$0xff]  }
 0xa48   : > { %3291 = vmatpush3.bf16.msra.mxu1 %v3489_v19 }
 0xa49   : > { %3304 = vmatprep.subr.bf16.mxu1 %v3994_v0 }
 0xa51   : > { %v1904_v24 = vpop.xlane.xlu0 %1903 }
 0xa52   : > { %v1905_v25 = vsub.f32 %v1901_v58, %v1904_v24 }
 0xa54   : > { %v1906_v26 = vmul.f32 1.442695, %v1905_v25 }
 0xa56   : > { %3514 = vpow2.f32 %v1906_v26 }
 0xa60   : > { %v3515_v27 = vpop.eup %3514 }
 0xa61   : > { %v1908_v15 = vsel %vm1223_vm3, %v3515_v27, 0.0 }
 0xa62   : > { %1909 = vadd.xlane.f32.xlu1 %v1908_v15 }
 0xa73   : > { %2031 = vrot.lane.b32.xlu1 %v3042_v30, %s3997_s19  ;;  %s2629_s19 = sshll.u32 %s838_s29, 4  ;;  %s2630_s19 = int_to_ptr.vmem [resolvable:$true] %s2629_s19 }
 0xa74   : > { %s3764_s10 = scalar_lea.vmem %s2630_s19, 64 }
 0xa75   : > { %p3765_p8 = scmp.ne.s32.totalorder %s2630_s19, %s3764_s10 }
 0xac4   : > { %v2018_v32 = vpop.xlane.xlu1 %2017 }
 0xac5   : > { %v2019_v34 = vsub.f32 %v2015_v2, %v2018_v32 }
 0xac7   : > { %v2020_v35 = vmul.f32 1.442695, %v2019_v34 }
 0xac9   : > { %3516 = vpow2.f32 %v2020_v35 }
 0xacc   : > { %v2133_v36 = vpop.xlane.xlu0 %2132 }
 0xacd   : > { %v2134_v37 = vsub.f32 %v2130_v7, %v2133_v36 }
 0xacf   : > { %v2135_v38 = vmul.f32 1.442695, %v2134_v37 }
 0xad1   : > { %3518 = vpow2.f32 %v2135_v38 }
 0xad3   : > { %v3517_v39 = vpop.eup %3516 }
 0xad4   : > { %v2245_v40 = vpop.xlane.xlu0 %2244  ;;  %v2022_v41 = vsel %vm1223_vm3, %v3517_v39, 0.0 }
 0xad5   : > { %v2246_v42 = vsub.f32 %v2242_v14, %v2245_v40  ;;  %2023 = vadd.xlane.f32.xlu0 %v2022_v41 }
 0xad7   : > { %v2247_v43 = vmul.f32 1.442695, %v2246_v42 }
 0xad9   : > { %3520 = vpow2.f32 %v2247_v43 }
 0xadb   : > { %v3519_v18 = vpop.eup %3518 }
 0xadc   : > { %v2137_v29 = vsel %vm1223_vm3, %v3519_v18, 0.0 }
 0xadd   : > { %2138 = vadd.xlane.f32.xlu1 %v2137_v29 }
 0xae3   : > { %v3521_v44 = vpop.eup %3520 }
 0xae4   : > { %v2249_v45 = vsel %vm1223_vm3, %v3521_v44, 0.0 }
 0xae5   : > { %2250 = vadd.xlane.f32.xlu0 %v2249_v45 }
 0xaee   : > { %2255 = vrot.lane.b32.xlu1 %v3042_v30, %s3998_s14  ;;  %s5054_s14 = scalar_lea.sflag [#allocation22], %s4437_s26 }
 0xaef   : > { %v1910_v46 = vpop.xlane.xlu1 %1909 }
 0xaf0   : > { %3522 = vrcp.f32 %v1910_v46 }
 0xaf3   : > { %v2032_v50 = vpop.permute.xlu1 %2031 }
 0xaf4   : > { %v2037_v52 = vsel %vm1286_vm4, %v2032_v50, 0 }
 0xafa   : > { %v3523_v48 = vpop.eup %3522 }
 0xafb   : > { %v1912_v49 = vmul.f32 %v3523_v48, %v3515_v27  ;;  %2143 = vrot.lane.b32.xlu0 %v3042_v30, %s3996_s13  ;;  %s4821_s13 = scalar_lea.hbm %s5124_s30, %s4815_s1 }
 0xafd   : > { %v1913_v51 = vpack.c.bf16 %v1912_v49, %v1912_v49 }
 0xaff   : > { %3249 = vmatmul.mubr.msk.bf16.vlgmr.msra.gmra.mrb[32].mxu0 %vm1223_vm3, %v1913_v51 }
 0xb00   : > { %3259 = vmatpush3.bf16.msra.mxu0 %v2037_v52  ;;  %3260 = vmatprep.mubr.msk.bf16.mxu0 %vm3995_vm0, %v3994_v0 }
 0xb01   : > { %3270 = vmatprep.subr.bf16.mxu0 %v3994_v0 }
 0xb62   : > { %v2024_v53 = vpop.xlane.xlu0 %2023 }
 0xb63   : > { %3524 = vrcp.f32 %v2024_v53 }
 0xb6a   : > { %v2139_v54 = vpop.xlane.xlu1 %2138 }
 0xb6b   : > { %3526 = vrcp.f32 %v2139_v54 }
 0xb6d   : > { %v3525_v56 = vpop.eup %3524 }
 0xb6e   : > { %v2026_v57 = vmul.f32 %v3525_v56, %v3517_v39  ;;  %v2256_v2 = vpop.permute.xlu1 %2255 }
 0xb6f   : > { %v2261_v31 = vsel %vm1286_vm4, %v2256_v2, 0  ;;  %v2404_v2 = vrot.slane %v4572_v55, %v1698_v61 }
 0xb70   : > { %v2027_v58 = vpack.c.bf16 %v2026_v57, %v2026_v57  ;;  %v3490_v57 = vld [vmem:[#allocation18] sm:$0xff]  }
 0xb72   : > { %3261 = vmatmul.mubr.msk.bf16.vlgmr.msra.gmra.mrb[36].mxu0 %vm1223_vm3, %v2027_v58  ;;  %v2251_v59 = vpop.xlane.xlu0 %2250  ;;  %v3493_v58 = vld [vmem:[%s5121_s8 + $0x8] sm:$0xff]  }
 0xb73   : > { %3528 = vrcp.f32 %v2251_v59  ;;  %3272 = vmatprep.mubr.msk.bf16.mxu0 %vm3995_vm0, %v3994_v0 }
 0xb75   : > { %v3527_v60 = vpop.eup %3526 }
 0xb76   : > { %v2141_v62 = vmul.f32 %v3527_v60, %v3519_v18  ;;  %v2144_v63 = vpop.permute.xlu0 %2143  ;;  %v2327_v18 = vrot.slane %v4572_v55, %v882_v17  ;;  %v3491_v17 = vld [vmem:[#allocation18 + $0x8] sm:$0xff]  }
 0xb77   : > { %v2149_v1 = vsel %vm1286_vm4, %v2144_v63, 0  ;;  %v2399_v63 = vrot.slane %v4572_v55, %v946_v47  ;;  %v3495_v47 = vld [vmem:[%s5121_s8 + $0x18] sm:$0xff]  }
 0xb78   : > { %3271 = vmatpush3.bf16.msra.mxu0 %v2149_v1  ;;  %v2142_v3 = vpack.c.bf16 %v2141_v62, %v2141_v62 }
 0xb79   : > { %3282 = vmatprep.subr.bf16.mxu0 %v3994_v0 }
 0xb7b   : > { %3273 = vmatmul.mubr.msk.bf16.vlgmr.msra.gmra.mrb[40].mxu0 %vm1223_vm3, %v2142_v3 }
 0xb7c   : > { %3283 = vmatpush3.bf16.msra.mxu0 %v2261_v31  ;;  %3284 = vmatprep.mubr.msk.bf16.mxu0 %vm3995_vm0, %v3994_v0 }
 0xb7d   : > { %v3529_v4 = vpop.eup %3528  ;;  %3296 = vmatprep.subr.bf16.mxu0 %v3994_v0 }
 0xb7e   : > { %v2253_v5 = vmul.f32 %v3529_v4, %v3521_v44 }
 0xb80   : > { %v2254_v6 = vpack.c.bf16 %v2253_v5, %v2253_v5 }
 0xb83   : > { %3285 = vmatmul.mubr.msk.bf16.vlgmr.msra.gmra.mrb[44].mxu0 %vm1223_vm3, %v2254_v6  ;;  %v3494_v6 = vld [vmem:[%s5121_s8 + $0x10] sm:$0xff]  }
 0xb84   : > { %3300 = vmatprep.mubr.msk.bf16.mxu0 %vm3995_vm0, %v3994_v0  ;;  %3297 = vmatpush3.bf16.msra.mxu0 %v3490_v57 }
 0xb85   : > { %3298 = vmatprep.subr.bf16.mxu0 %v3994_v0 }
 0xb88   : > { %3299 = vmatpush3.bf16.msra.mxu0 %v3491_v17 }
 0xbd2   : > { %v1954_v7 = vpop.f32.mrb[32].mxu0 }
 0xbd3   : > { %v3250_v8 = vpop.f32.mrb[33].mxu0  ;;  %v1960_v38 = vpack.c.bf16 %v1954_v7, %v1954_v7 }
 0xbd4   : > { %v1957_v9 = vpop.f32.mrb[34].mxu0 }
 0xbd5   : > { %v3251_v10 = vpop.f32.mrb[35].mxu0 }
 0xc45   : > { %v2073_v13 = vpop.f32.mrb[36].mxu0 }
 0xc46   : > { %v2079_v14 = vpack.c.bf16 %v2073_v13, %v2073_v13  ;;  %v3262_v11 = vpop.f32.mrb[37].mxu0 }
 0xc47   : > { %v2076_v20 = vpop.f32.mrb[38].mxu0 }
 0xc48   : > { %2305 = vrot.lane.b32.xlu1 %v2079_v14, %s3999_s20  ;;  %v3263_v21 = vpop.f32.mrb[39].mxu0  ;;  %s3768_s20 = sshll.u32 %s4003_s15, 4  ;;  %s3769_s20 = int_to_ptr.vmem [resolvable:$false] %s3768_s20 }
 0xc49   : > { %p3771_p11 = scmp.lt.s32.totalorder %s2630_s19, %s3769_s20 }
 0xc4e   : > { %v2185_v24 = vpop.f32.mrb[40].mxu0 }
 0xc4f   : > { %v2191_v25 = vpack.c.bf16 %v2185_v24, %v2185_v24  ;;  %v3274_v26 = vpop.f32.mrb[41].mxu0 }
 0xc50   : > { %v2188_v27 = vpop.f32.mrb[42].mxu0 }
 0xc51   : > { %2308 = vrot.lane.b32.xlu0 %v2191_v25, %s4000_s3  ;;  %v3275_v15 = vpop.f32.mrb[43].mxu0  ;;  %s5122_s3 = sld [smem:[#allocation55_spill]] }
 0xc56   : > { %v2297_v30 = vpop.f32.mrb[44].mxu0 }
 0xc57   : > { %v2303_v32 = vpack.c.bf16 %v2297_v30, %v2297_v30  ;;  %v3286_v34 = vpop.f32.mrb[45].mxu0  ;;  %v3051_v61 = vld [vmem:[%s5122_s3] ss:$0 sm:$0xff]  ;;  %s3770_s3 = scalar_lea.vmem %s3769_s20, 128 }
 0xc58   : > { %v2300_v35 = vpop.f32.mrb[46].mxu0  ;;  %p3772_p5 = scmp.lt.s32.totalorder %s3770_s3, %s3764_s10 }
 0xc59   : > { %2311 = vrot.lane.b32.xlu1 %v2303_v32, %s4001_s28  ;;  %v3287_v36 = vpop.f32.mrb[47].mxu0  ;;  %s5123_s28 = sld [smem:[#allocation39_spill]] }
 0xc5a   : > { %p3773_p2 = por %p3772_p5, %p3771_p11 }
 0xc5f   : > { %p5125_p1 = scmp.ne.s32.totalorder %s5123_s28, 0 }
 0xc61   : > { %p3766_p9 = pnand %p3765_p8, %p5125_p1 }
 0xc63   : > { %p3767_p7 = pneg %p3766_p9 }
 0xc65   : > { %p3774_p12 = pnand %p3773_p2, %p3767_p7 }
 0xcba   : > { %v2306_v37 = vpop.permute.xlu1 %2305 }
 0xcbb   : > { %v2315_v40 = vsel %vm1223_vm3, %v1960_v38, %v2306_v37 }
 0xcc3   : > { %v2309_v39 = vpop.permute.xlu0 %2308 }
 0xcc4   : > { %v2317_v41 = vsel %vm1686_vm6, %v2315_v40, %v2309_v39 }
 0xccb   : > { %v2312_v42 = vpop.permute.xlu1 %2311 }
 0xccc   : > { %v2319_v43 = vsel %vm1689_vm7, %v2317_v41, %v2312_v42 }
 0xccd   : > { %3293 = vmatmul.mubr.msk.bf16.vlgmr.msra.gmra.mrb[44].mxu1 %vm896_vm1, %v2319_v43 }
 0xcce   : > { %3312 = vmatprep.mubr.msk.bf16.mxu1 %vm3995_vm0, %v3994_v0 }
 0xda0   : > { %v2376_v29 = vpop.f32.mrb[44].mxu1 }
 0xda1   : > { %v2377_v44 = vadd.f32 %v2376_v29, %v2327_v18  ;;  %v3294_v45 = vpop.f32.mrb[45].mxu1 }
 0xda2   : > { %v2379_v46 = vpop.f32.mrb[46].mxu1 }
 0xda3   : > { %v3295_v48 = vpop.f32.mrb[47].mxu1  ;;  %v2382_v49 = vadd.f32 %v2377_v44, %v4679_v28  ;;  %v3492_v28 = vld [vmem:[%s5121_s8] sm:$0xff]  }
 0xda4   : > { %3305 = vmatpush3.bf16.msra.mxu1 %v3492_v28 }
 0xda5   : > { %v2383_v50 = vsel %vm896_vm1, %v2382_v49, 0.0  ;;  %3306 = vmatprep.subr.bf16.mxu1 %v3994_v0 }
 0xda6   : > { %2384 = vadd.xlane.f32.xlu0 %v2383_v50 }
 0xda8   : > { %3307 = vmatpush3.bf16.msra.mxu1 %v3493_v58 }
 0xda9   : > { %3308 = vmatprep.subr.bf16.mxu1 %v3994_v0 }
 0xdac   : > { %3309 = vmatpush3.bf16.msra.mxu1 %v3494_v6 }
 0xdad   : > { %3310 = vmatprep.subr.bf16.mxu1 %v3994_v0  ;;  %v2486_v0 = vrot.slane %v4572_v55, %v1771_v22 }
 0xdb0   : > { %3311 = vmatpush3.bf16.msra.mxu1 %v3495_v47 }
 0xe33   : > { %v2385_v51 = vpop.xlane.xlu0 %2384 }
 0xe34   : > { %v2386_v52 = vmul.f32 0.03125, %v2385_v51 }
 0xe36   : > { %v2387_v53 = vsub.f32 %v2382_v49, %v2386_v52 }
 0xe38   : > { %v2388_v54 = vmul.f32 %v2387_v53, %v2387_v53 }
 0xe3a   : > { %v2389_v56 = vsel %vm896_vm1, %v2388_v54, 0.0 }
 0xe3b   : > { %2390 = vadd.xlane.f32.xlu1 %v2389_v56 }
 0xec8   : > { %v2391_v59 = vpop.xlane.xlu1 %2390 }
 0xec9   : > { %v2392_v60 = vmul.f32 0.03125, %v2391_v59 }
 0xecb   : > { %v2393_v62 = vadd.f32 1e-05, %v2392_v60 }
 0xecd   : > { %3530 = vrsqrt.f32 %v2393_v62 }
 0xed7   : > { %v3531_v1 = vpop.eup %3530 }
 0xed8   : > { %v2395_v3 = vmul.f32 %v3531_v1, %v2387_v53 }
 0xeda   : > { %v2400_v31 = vmul.f32 %v2399_v63, %v2395_v3 }
 0xedc   : > { %v2405_v4 = vadd.f32 %v2404_v2, %v2400_v31 }
 0xede   : > { %v2406_v5 = vpack.c.bf16 %v2405_v4, %v2405_v4 }
 0xee0   : > { %3301 = vmatmul.mubr.msk.bf16.vlgmr.msra.gmra.mrb[48].mxu0 %vm896_vm1, %v2406_v5 }
 0xfb3   : > { %v2467_v7 = vpop.f32.mrb[48].mxu0 }
 0xfb4   : > { %v2468_v8 = vadd.f32 %v3051_v61, %v2467_v7  ;;  %v3302_v9 = vpop.f32.mrb[49].mxu0 }
 0xfb5   : > { %v2470_v10 = vpop.f32.mrb[50].mxu0 }
 0xfb6   : > { %v2473_v12 = vmax.f32 %v2468_v8, 0.0  ;;  %v3303_v13 = vpop.f32.mrb[51].mxu0 }
 0xfb8   : > { %v2474_v14 = vpack.c.bf16 %v2473_v12, %v2473_v12 }
 0xfba   : > { %3313 = vmatmul.mubr.msk.bf16.vlgmr.msra.gmra.mrb[48].mxu1 %vm2511_vm10, %v2474_v14 }
0x108d   : > { %v2549_v11 = vpop.f32.mrb[48].mxu1 }
0x108e   : > { %v2550_v19 = vadd.f32 %v2549_v11, %v2486_v0  ;;  %v3314_v20 = vpop.f32.mrb[49].mxu1 }
0x108f   : > { %v2552_v21 = vpop.f32.mrb[50].mxu1 }
0x1090   : > { %v3315_v24 = vpop.f32.mrb[51].mxu1  ;;  %v2555_v25 = vadd.f32 %v2550_v19, %v2405_v4 }
0x1092   : > { %v2556_v26 = vsel %vm896_vm1, %v2555_v25, 0.0 }
0x1093   : > { %2557 = vadd.xlane.f32.xlu0 %v2556_v26 }
0x1120   : > { %v2558_v27 = vpop.xlane.xlu0 %2557 }
0x1121   : > { %v2559_v15 = vmul.f32 0.03125, %v2558_v27 }
0x1123   : > { %v4809_v30 = vsub.f32 %v2555_v25, %v2559_v15 }
0x1125   : > { %v2561_v32 = vmul.f32 %v4809_v30, %v4809_v30 }
0x1127   : > { %v2562_v22 = vsel %vm896_vm1, %v2561_v32, 0.0 }
0x1128   : > { %2563 = vadd.xlane.f32.xlu0 %v2562_v22 }
0x1129   : > { %3777 = shalt.err (!%p3774_p12)
}
0x112a   : > { %s3778_s29 = scalar_lea.hbm %s4821_s13, 64  ;;  %s3782_s15 = scalar_lea.hbm %s5124_s30, 128 }
0x112b   : > { %p3779_p0 = scmp.ne.s32.totalorder %s4821_s13, %s3778_s29  ;;  %p3783_p13 = scmp.lt.u32.totalorder %s4821_s13, %s5124_s30 }
0x112c   : > { %p3784_p3 = scmp.lt.u32.totalorder %s3782_s15, %s3778_s29  ;;  %p3786_p8 = scmp.lt.u32.totalorder %s3778_s29, %s4821_s13 }
0x112d   : > { %p3780_p4 = pnand %p3779_p0, %p5125_p1 }
0x112e   : > { %p3785_p6 = por %p3784_p3, %p3783_p13 }
0x112f   : > { %p3781_p10 = pneg %p3780_p4 }
0x1130   : > { %p3787_p9 = por %p3786_p8, %p3785_p6 }
0x1132   : > { %p3788_p7 = pnand %p3787_p9, %p3781_p10 }
0x1134   : > { %3791 = shalt.err (!%p3788_p7)
}
0x1135   : > { %3343 = dma.vmem_to_hbm [thread:$0]  (%p5125_p1), %s2630_s19, 64, %s4821_s13, %s5054_s14  }
0x1136   : > { %s5126_s27 = sld [smem:[#allocation59_spill]]  ;;  %s2656_s29 = sshll.u32 %s852_s23, 4  ;;  %s2657_s29 = int_to_ptr.vmem [resolvable:$true] %s2656_s29 }
0x1137   : > { %s2596_s21 = scalar_lea.sflag [#allocation25], %s4437_s26  ;;  %s3792_s15 = scalar_lea.vmem %s2657_s29, 64 }
0x1138   : > { %p3793_p11 = scmp.ne.s32.totalorder %s2657_s29, %s3792_s15  ;;  %s4004_s20 = smov [#allocation24]  }
0x1139   : > { %s3796_s4 = sshll.u32 %s4004_s20, 4  ;;  %s3797_s4 = int_to_ptr.vmem [resolvable:$false] %s3796_s4 }
0x113a   : > { %p3794_p5 = pnand %p3793_p11, %p5125_p1  ;;  %s3798_s0 = scalar_lea.vmem %s3797_s4, 128 }
0x113b   : > { %p3799_p12 = scmp.lt.s32.totalorder %s2657_s29, %s3797_s4  ;;  %p3800_p0 = scmp.lt.s32.totalorder %s3798_s0, %s3792_s15 }
0x113c   : > { %s4849_s7 = scalar_lea.hbm %s5126_s27, %s4815_s1  ;;  %p3795_p2 = pneg %p3794_p5 }
0x113d   : > { %p3801_p4 = por %p3800_p0, %p3799_p12 }
0x113f   : > { %p3802_p10 = pnand %p3801_p4, %p3795_p2 }
0x1141   : > { %3805 = shalt.err (!%p3802_p10)
}
0x1142   : > { %s3806_s23 = scalar_lea.hbm %s4849_s7, 64  ;;  %s3810_s10 = scalar_lea.hbm %s5126_s27, 128 }
0x1143   : > { %p3807_p13 = scmp.ne.s32.totalorder %s4849_s7, %s3806_s23  ;;  %p3811_p8 = scmp.lt.u32.totalorder %s4849_s7, %s5126_s27 }
0x1144   : > { %p3812_p9 = scmp.lt.u32.totalorder %s3810_s10, %s3806_s23  ;;  %p3814_p11 = scmp.lt.u32.totalorder %s3806_s23, %s4849_s7 }
0x1145   : > { %p3808_p3 = pnand %p3807_p13, %p5125_p1 }
0x1146   : > { %p3813_p7 = por %p3812_p9, %p3811_p8 }
0x1147   : > { %p3809_p6 = pneg %p3808_p3 }
0x1148   : > { %p3815_p5 = por %p3814_p11, %p3813_p7 }
0x114a   : > { %p3816_p2 = pnand %p3815_p5, %p3809_p6 }
0x114c   : > { %3819 = shalt.err (!%p3816_p2)
}
0x114d   : > { %3345 = dma.vmem_to_hbm [thread:$0]  (%p5125_p1), %s2657_s29, 64, %s4849_s7, %s2596_s21  }
0x114e   : > { %s5127_s20 = sld [smem:[#allocation58_spill]]  ;;  %s5128_s19 = scalar_lea.vmem [#allocation23], %s4428_s25 }
0x114f   : > { %s2643_s23 = sshll.u32 %s5128_s19, 4  ;;  %s5129_s4 = sld [smem:[#allocation60_spill]]  ;;  %s2644_s23 = int_to_ptr.vmem [resolvable:$true] %s2643_s23 }
0x1150   : > { %s3820_s5 = scalar_lea.vmem %s2644_s23, 64  ;;  %s4005_s6 = smov [#allocation23]  }
0x1151   : > { %p3821_p12 = scmp.ne.s32.totalorder %s2644_s23, %s3820_s5  ;;  %s3824_s7 = sshll.u32 %s4005_s6, 4  ;;  %s3825_s7 = int_to_ptr.vmem [resolvable:$false] %s3824_s7 }
0x1152   : > { %s3826_s29 = scalar_lea.vmem %s3825_s7, 128  ;;  %p3827_p10 = scmp.lt.s32.totalorder %s2644_s23, %s3825_s7 }
0x1153   : > { %p3822_p0 = pnand %p3821_p12, %p5125_p1  ;;  %p3828_p13 = scmp.lt.s32.totalorder %s3826_s29, %s3820_s5 }
0x1154   : > { %s4877_s13 = scalar_lea.hbm %s5127_s20, %s4815_s1 }
0x1155   : > { %s4885_s14 = scalar_lea.hbm %s5129_s4, %s4815_s1  ;;  %p3823_p4 = pneg %p3822_p0 }
0x1156   : > { %p3829_p3 = por %p3828_p13, %p3827_p10 }
0x1158   : > { %p3830_p6 = pnand %p3829_p3, %p3823_p4 }
0x115a   : > { %3833 = shalt.err (!%p3830_p6)
}
0x115b   : > { %s3834_s1 = scalar_lea.hbm %s4877_s13, 64  ;;  %s3838_s6 = scalar_lea.hbm %s5127_s20, 128 }
0x115c   : > { %p3835_p8 = scmp.ne.s32.totalorder %s4877_s13, %s3834_s1  ;;  %p3839_p11 = scmp.lt.u32.totalorder %s4877_s13, %s5127_s20 }
0x115d   : > { %p3840_p5 = scmp.lt.u32.totalorder %s3838_s6, %s3834_s1  ;;  %p3842_p12 = scmp.lt.u32.totalorder %s3834_s1, %s4877_s13 }
0x115e   : > { %p3836_p9 = pnand %p3835_p8, %p5125_p1 }
0x115f   : > { %p3841_p2 = por %p3840_p5, %p3839_p11 }
0x1160   : > { %p3837_p7 = pneg %p3836_p9 }
0x1161   : > { %p3843_p0 = por %p3842_p12, %p3841_p2 }
0x1163   : > { %p3844_p4 = pnand %p3843_p0, %p3837_p7 }
0x1165   : > { %3847 = shalt.err (!%p3844_p4)
}
0x1166   : > { %s5130_s5 = scalar_lea.sflag [#allocation22], %s4437_s26  ;;  %s5131_s3 = scalar_lea.vmem [#allocation26], %s4428_s25 }
0x1167   : > { %3344 = dma.vmem_to_hbm [thread:$0]  (%p5125_p1), %s2644_s23, 64, %s4877_s13, %s5130_s5  }
0x1168   : > { %s2669_s7 = sshll.u32 %s5131_s3, 4  ;;  %s4006_s1 = smov [#allocation26]   ;;  %s2670_s7 = int_to_ptr.vmem [resolvable:$true] %s2669_s7 }
0x1169   : > { %s3848_s29 = scalar_lea.vmem %s2670_s7, 64  ;;  %s3852_s0 = sshll.u32 %s4006_s1, 4  ;;  %s3853_s0 = int_to_ptr.vmem [resolvable:$false] %s3852_s0 }
0x116a   : > { %p3849_p10 = scmp.ne.s32.totalorder %s2670_s7, %s3848_s29  ;;  %s3854_s15 = scalar_lea.vmem %s3853_s0, 128 }
0x116b   : > { %p3855_p6 = scmp.lt.s32.totalorder %s2670_s7, %s3853_s0  ;;  %p3856_p8 = scmp.lt.s32.totalorder %s3854_s15, %s3848_s29 }
0x116c   : > { %p3850_p13 = pnand %p3849_p10, %p5125_p1 }
0x116d   : > { %p3857_p9 = por %p3856_p8, %p3855_p6 }
0x116e   : > { %p3851_p3 = pneg %p3850_p13 }
0x1170   : > { %p3858_p7 = pnand %p3857_p9, %p3851_p3 }
0x1172   : > { %3861 = shalt.err (!%p3858_p7)
}
0x1173   : > { %s3862_s25 = scalar_lea.hbm %s4885_s14, 64  ;;  %s3866_s6 = scalar_lea.hbm %s5129_s4, 128 }
0x1174   : > { %p3863_p11 = scmp.ne.s32.totalorder %s4885_s14, %s3862_s25  ;;  %p3867_p12 = scmp.lt.u32.totalorder %s4885_s14, %s5129_s4 }
0x1175   : > { %p3868_p0 = scmp.lt.u32.totalorder %s3866_s6, %s3862_s25  ;;  %p3870_p10 = scmp.lt.u32.totalorder %s3862_s25, %s4885_s14 }
0x1176   : > { %p3864_p5 = pnand %p3863_p11, %p5125_p1 }
0x1177   : > { %p3869_p4 = por %p3868_p0, %p3867_p12 }
0x1178   : > { %p3865_p2 = pneg %p3864_p5 }
0x1179   : > { %p3871_p13 = por %p3870_p10, %p3869_p4 }
0x117b   : > { %p3872_p3 = pnand %p3871_p13, %p3865_p2 }
0x117d   : > { %3875 = shalt.err (!%p3872_p3)
}
0x117e   : > { %3346 = dma.vmem_to_hbm [thread:$0]  (%p5125_p1), %s2670_s7, 64, %s4885_s14, %s2596_s21   ;;  %v2572_v37 = vrot.slane %v4572_v55, %v1776_v23  ;;  %v2577_v39 = vrot.slane %v4572_v55, %v1786_v33 }
0x117f   : > { %s3001_s5 = sshll.u32 %s4425_s11, 3  ;;  %s3065_s26 = sshll.u32 %s3974_s24, 7 }
0x1180   : > { %s831_s14 = scalar_lea.vmem [#allocation20], %s3001_s5  ;;  %s5132_s29 = sld [smem:[#allocation56_spill]] }
0x1181   : > { %s2615_s21 = sshll.u32 %s831_s14, 4  ;;  %s2581_s0 = scalar_lea.sflag [#allocation8], %s4425_s11  ;;  %s4941_s21 = int_to_ptr.vmem [resolvable:$true] %s2615_s21 }
0x1182   : > { %s3876_s15 = scalar_lea.vmem %s4941_s21, 128  ;;  %s4007_s24 = smov [#allocation20]  }
0x1183   : > { %p3877_p6 = scmp.ne.s32.totalorder %s4941_s21, %s3876_s15  ;;  %s3880_s25 = sshll.u32 %s4007_s24, 4  ;;  %s3881_s25 = int_to_ptr.vmem [resolvable:$false] %s3880_s25 }
0x1184   : > { %s3882_s13 = scalar_lea.vmem %s3881_s25, 256  ;;  %p3883_p7 = scmp.lt.s32.totalorder %s4941_s21, %s3881_s25 }
0x1185   : > { %p3878_p8 = pnand %p3877_p6, %p5125_p1  ;;  %p3884_p11 = scmp.lt.s32.totalorder %s3882_s13, %s3876_s15 }
0x1186   : > { %s4939_s1 = scalar_lea.hbm %s5132_s29, %s3065_s26 }
0x1187   : > { %p3879_p9 = pneg %p3878_p8  ;;  %p3885_p5 = por %p3884_p11, %p3883_p7 }
0x1189   : > { %p3886_p2 = pnand %p3885_p5, %p3879_p9 }
0x11b5   : > { %v2564_v34 = vpop.xlane.xlu0 %2563 }
0x11b6   : > { %v2565_v35 = vmul.f32 0.03125, %v2564_v34 }
0x11b8   : > { %v2566_v36 = vadd.f32 1e-05, %v2565_v35 }
0x11ba   : > { %3532 = vrsqrt.f32 %v2566_v36 }
0x11c4   : > { %v3533_v38 = vpop.eup %3532 }
0x11c5   : > { %v2568_v40 = vmul.f32 %v3533_v38, %v4809_v30 }
0x11c7   : > { %v2573_v41 = vmul.f32 %v2572_v37, %v2568_v40 }
0x11c9   : > { %v2578_v42 = vadd.f32 %v2577_v39, %v2573_v41 }
0x11cb   : > { %2579 = vst.msk [vmem:[%s831_s14] sm:$0xff] %vm896_vm1, %v2578_v42 }
0x11cc   : > { %3889 = shalt.err (!%p3886_p2)
}
0x11cd   : > { %s3890_s11 = scalar_lea.hbm %s4939_s1, 128  ;;  %s3894_s19 = scalar_lea.hbm %s5132_s29, 256 }
0x11ce   : > { %p3891_p12 = scmp.ne.s32.totalorder %s4939_s1, %s3890_s11  ;;  %p3895_p10 = scmp.lt.u32.totalorder %s4939_s1, %s5132_s29 }
0x11cf   : > { %p3896_p13 = scmp.lt.u32.totalorder %s3894_s19, %s3890_s11  ;;  %p3898_p6 = scmp.lt.u32.totalorder %s3890_s11, %s4939_s1 }
0x11d0   : > { %p3892_p0 = pnand %p3891_p12, %p5125_p1 }
0x11d1   : > { %p3897_p3 = por %p3896_p13, %p3895_p10 }
0x11d2   : > { %p3893_p4 = pneg %p3892_p0 }
0x11d3   : > { %p3899_p8 = por %p3898_p6, %p3897_p3 }
0x11d5   : > { %p3900_p9 = pnand %p3899_p8, %p3893_p4 }
0x11d7   : > { %3903 = shalt.err (!%p3900_p9)
}
0x11d8   : > { %3342 = dma.vmem_to_hbm [thread:$0]  (%p5125_p1), %s4941_s21, 128, %s4939_s1, %s2581_s0  }
0x11d9 PF: > { %s5133_s26 = sld [smem:[#allocation35_spill]]  ;;  %s5134_s14 = sld [smem:[#allocation41_spill]] }
0x11da   : > { %s5135_s3 = sld [smem:[#allocation37_spill]] }
0x11df   : > { %s2681_s7 = sand.u32 1, %s5133_s26   ;;  %p5136_p7 = scmp.ne.s32.totalorder %s5134_s14, 0 }
0x11e0   : > { %p5137_p11 = scmp.ge.s32.totalorder %s5135_s3, 2  ;;  %s2682_s15 = scalar_lea.sflag [#allocation8], %s2681_s7 }
0x11e2   : > { %p3379_p5 = pnand %p5137_p11, %p5136_p7 }
0x11e4   : > { %3949 = dma.done.wait (!%p3379_p5), %s2682_s15, 128  }
0x11e5   : > { %3951 = vsyncadd (!%p3379_p5), %s2682_s15, 4294967168  ;;  %s5138_s24 = sadd.s32 4294967294, %s5135_s3  }
0x11e6   : > { %s2690_s25 = sand.u32 1, %s5138_s24  }
0x11e7   : > { %s2691_s13 = scalar_lea.sflag [#allocation22], %s2690_s25 }
0x11e8   : > { %3953 = dma.done.wait (!%p3379_p5), %s2691_s13, 128  }
0x11e9   : > { %3955 = vsyncadd (!%p3379_p5), %s2691_s13, 4294967168  ;;  %s2709_s28 = scalar_lea.sflag [#allocation25], %s2690_s25 }
0x11ea   : > { %3957 = dma.done.wait (!%p3379_p5), %s2709_s28, 128  }
0x11eb   : > { %3959 = vsyncadd (!%p3379_p5), %s2709_s28, 4294967168  ;;  %s49_s25 = sadd.s32 1, %s5135_s3   ;;  %s5139_s21 = sld [smem:[#allocation36_spill]] }
0x11ec   : > { %p46_p1 = scmp.ge.s32.totalorder %s49_s25, 4   ;;  %s5140_s23 = sld [smem:[#allocation40_spill]] }
0x11ed   : > { %s5141_s0 = sld [smem:[#allocation38_spill]]  ;;  %s5142_s1 = smov %s3966_s22 }
0x11ee   : > { %s5144_s24 = smov %s3978_s2  ;;  %48 = sbr.rel (!%p46_p1) target bundleno = 35 (0x23), region = 246 }
0x11f1   : > { %s5143_s22 = smov %s5139_s21 }
0x11f3   : > { %s5145_s2 = smov %s5141_s0 }
0x11f5   :  { %2723 = vsyncpa [#allocation7], 1 }
0x11f6   :  { %2725 = vsyncpa [#allocation7 + $0x1], 1 }
0x11f7   :  { %2726 = vsyncpa [#allocation10], 1 }
0x11f8   :  { %2728 = vsyncpa [#allocation10 + $0x1], 1 }
0x11f9   :  { %2729 = vsyncpa [#allocation13], 1 }
0x11fa   :  { %2730 = vsyncpa [#allocation16], 1 }
0x11fb   :  { %2731 = vsyncpa [#allocation19], 1 }
0x11fc   :  { %2732 = vsyncpa [#allocation8], 1 }
0x11fd   :  { %2734 = vsyncpa [#allocation8 + $0x1], 1 }
0x11fe   :  { %2735 = vsyncpa [#allocation22], 1 }
0x11ff   :  { %2737 = vsyncpa [#allocation22 + $0x1], 1 }
0x1200   :  { %2738 = vsyncpa [#allocation25], 1 }
0x1201   :  { %2740 = vsyncpa [#allocation25 + $0x1], 1 }

</bundles_post_ra>
